<compile_context>
chip_gen: v6e
topology: v6e:2x2x1
jax: 0.10.0
libtpu: 0.0.40
codegen_flags: <defaults>
</compile_context>

<pallas_src>
import functools

import jax
import jax.numpy as jnp
import numpy as np
from jax.experimental import pallas as pl
from jax.experimental.pallas import tpu as pltpu


def _continuous_lstm_kernel(
    gx_ref,      # (Tc*B, 4H)    precomputed x @ W_ih + b   (rows: step-major, batch-minor)
    zb_ref,      # (L, Tc*B, Hh) precomputed t * w1_t + fb1 (flow layer-1 bias incl. time column)
    tg_ref,      # (L, Tc*B, H)  precomputed tanh(fts * t)  (TimeTanh gate)
    whh_ref,     # (H, 4H)       LSTMCell weight_hh^T
    fw1h_ref,    # (L, H, Hh)    flow MLP layer-1 weights (state part only)
    fw2_ref,     # (L, Hh, H)    flow MLP layer-2 weights
    fb2_ref,     # (L, 1, H)     flow MLP layer-2 bias
    out_ref,     # (Tc*B, H)     output block (h_pre per step, flattened over the chunk)
    gate_h_scr,  # VMEM (B, H)   persistent LSTM hidden state  (torch variable `c`)
    cell_scr,    # VMEM (B, H)   persistent LSTM cell state    (torch variable `h`)
    cells_scr,   # VMEM (Tc*B, H) cell state entering each step of this chunk (flow input)
    *,
    batch: int,
    hidden_dim: int,
    n_flow_layers: int,
    time_chunk: int,
):
    B, H, L, Tc = batch, hidden_dim, n_flow_layers, time_chunk

    @pl.when(pl.program_id(0) == 0)
    def _():
        gate_h_scr[...] = jnp.zeros_like(gate_h_scr)
        cell_scr[...] = jnp.zeros_like(cell_scr)

    whh = whh_ref[...]          # hoisted weight load
    gate_h = gate_h_scr[...]    # (B, H) drives the gates (torch `c`)
    cell = cell_scr[...]        # (B, H) LSTM cell state, flow input (torch `h`)

    # ---- Phase 1: serial LSTM recurrence (the only serial dependency) ----
    for s in range(Tc):
        # Cell state *entering* step s is the flow input for this step's output.
        cells_scr[pl.ds(s * B, B), :] = cell

        gates = gx_ref[pl.ds(s * B, B), :] + jnp.dot(
            gate_h, whh, preferred_element_type=jnp.float32)          # (B, 4H)
        # PyTorch gate order: i, f, g, o
        i_g = jax.nn.sigmoid(gates[:, 0 * H:1 * H])
        f_g = jax.nn.sigmoid(gates[:, 1 * H:2 * H])
        g_g = jnp.tanh(gates[:, 2 * H:3 * H])
        o_g = jax.nn.sigmoid(gates[:, 3 * H:4 * H])

        cell = f_g * cell + i_g * g_g          # c_1 = f * c_0 + i * g   (c_0 = torch `h`)
        gate_h = o_g * jnp.tanh(cell)          # h_1 -> torch `c`

    gate_h_scr[...] = gate_h
    cell_scr[...] = cell

    # ---- Phase 2: ResNet flow, batched over all Tc*B rows of the chunk ----
    y = cells_scr[...]                                                 # (Tc*B, H)
    for l in range(L):
        z = jnp.tanh(
            jnp.dot(y, fw1h_ref[l], preferred_element_type=jnp.float32)
            + zb_ref[l])                                               # (Tc*B, Hh)
        resid = jnp.dot(z, fw2_ref[l], preferred_element_type=jnp.float32) + fb2_ref[l]
        y = y + tg_ref[l] * resid
    out_ref[...] = y


def continuous_lstm_layer(x, t, params, *, hidden_dim, n_flow_layers, time_chunk=8):
    """x: (B, T, D) f32, t: (B, T, 1) f32 -> hiddens: (B, T, H) f32."""
    B, T, D = x.shape
    H = hidden_dim
    L = n_flow_layers
    fw1 = params["fw1"]                      # (L, H+1, Hh)
    Hh = fw1.shape[-1]

    x_tm = jnp.transpose(x, (1, 0, 2)).astype(jnp.float32)   # (T, B, D)
    t_tm = jnp.transpose(t, (1, 0, 2)).astype(jnp.float32)   # (T, B, 1)

    # ---- recurrence-independent precomputation (batched over all T steps, plain XLA) ----
    gx = x_tm @ params["wih"] + params["b"]                          # (T, B, 4H)
    fw1_h = fw1[:, :H, :]                                            # (L, H, Hh)
    fw1_t = fw1[:, H:H + 1, :]                                       # (L, 1, Hh)
    zb = t_tm[:, None, :, :] * fw1_t[None] + params["fb1"][None]     # (T, L, B, Hh)
    tg = jnp.tanh(params["fts"][None] * t_tm[:, None, :, :])         # (T, L, B, H)

    # ---- pad T to a multiple of the time chunk (padded steps are discarded) ----
    Tc = min(time_chunk, T)
    Tp = Tc * pl.cdiv(T, Tc)
    pad = Tp - T
    if pad:
        gx = jnp.pad(gx, ((0, pad), (0, 0), (0, 0)))
        zb = jnp.pad(zb, ((0, pad), (0, 0), (0, 0), (0, 0)))
        tg = jnp.pad(tg, ((0, pad), (0, 0), (0, 0), (0, 0)))

    # ---- flatten to (time*batch)-row-major layouts (sublane merge done once, outside) ----
    gx2 = gx.reshape(Tp * B, 4 * H)                                   # (Tp*B, 4H)
    zb2 = jnp.transpose(zb, (1, 0, 2, 3)).reshape(L, Tp * B, Hh)      # (L, Tp*B, Hh)
    tg2 = jnp.transpose(tg, (1, 0, 2, 3)).reshape(L, Tp * B, H)       # (L, Tp*B, H)

    R = Tc * B  # rows per chunk
    full = lambda shape: pl.BlockSpec(shape, lambda i, _s=len(shape): (0,) * _s)

    kernel = functools.partial(
        _continuous_lstm_kernel,
        batch=B, hidden_dim=H, n_flow_layers=L, time_chunk=Tc,
    )

    out = pl.pallas_call(
        kernel,
        out_shape=jax.ShapeDtypeStruct((Tp * B, H), jnp.float32),
        grid_spec=pltpu.PrefetchScalarGridSpec(
            num_scalar_prefetch=0,
            grid=(Tp // Tc,),
            in_specs=[
                pl.BlockSpec((R, 4 * H), lambda i: (i, 0)),
                pl.BlockSpec((L, R, Hh), lambda i: (0, i, 0)),
                pl.BlockSpec((L, R, H), lambda i: (0, i, 0)),
                full((H, 4 * H)),
                full((L, H, Hh)),
                full((L, Hh, H)),
                full((L, 1, H)),
            ],
            out_specs=pl.BlockSpec((R, H), lambda i: (i, 0)),
            scratch_shapes=[
                pltpu.VMEM((B, H), jnp.float32),     # gate_h (torch `c`)
                pltpu.VMEM((B, H), jnp.float32),     # cell   (torch `h`)
                pltpu.VMEM((R, H), jnp.float32),     # per-chunk flow inputs
            ],
        ),
        compiler_params=pltpu.CompilerParams(
            dimension_semantics=("arbitrary",),      # time recurrence is serial
        ),
    )(gx2, zb2, tg2, params["whh"], fw1_h, params["fw2"], params["fb2"])

    out = out.reshape(Tp, B, H)[:T]
    return jnp.transpose(out, (1, 0, 2))             # (B, T, H)


def reference(x, t, params, *, hidden_dim, n_flow_layers):
    """Pure-JAX reference of the literal PyTorch forward (incl. the (c, h) tuple ordering)."""
    B, T, D = x.shape
    H = hidden_dim
    c_var = jnp.zeros((B, H), jnp.float32)   # torch variable `c` (LSTM hidden state)
    h_var = jnp.zeros((B, H), jnp.float32)   # torch variable `h` (LSTM cell state)
    outs = []
    for i in range(T):
        t_i = t[:, i]                                  # (B, 1)
        hp = h_var
        for l in range(n_flow_layers):
            fw1 = params["fw1"][l]
            z = jnp.tanh(hp @ fw1[:H] + t_i @ fw1[H:H + 1] + params["fb1"][l])
            resid = z @ params["fw2"][l] + params["fb2"][l]
            hp = hp + jnp.tanh(params["fts"][l] * t_i) * resid
        # nn.LSTMCell(x_i, (c_var, h_var)): hidden = c_var, cell = h_var; returns (h1, c1)
        gates = x[:, i] @ params["wih"] + c_var @ params["whh"] + params["b"]
        i_g = jax.nn.sigmoid(gates[:, 0 * H:1 * H])
        f_g = jax.nn.sigmoid(gates[:, 1 * H:2 * H])
        g_g = jnp.tanh(gates[:, 2 * H:3 * H])
        o_g = jax.nn.sigmoid(gates[:, 3 * H:4 * H])
        c1 = f_g * h_var + i_g * g_g
        h1 = o_g * jnp.tanh(c1)
        c_var, h_var = h1, c1
        outs.append(hp)
    return jnp.stack(outs, axis=1)                     # (B, T, H)


def init_params(key, dim, hidden_dim, hidden_mlp_dim, n_flow_layers):
    """Deterministic synthetic parameters (PyTorch-style uniform init ranges)."""
    ks = jax.random.split(key, 10)
    H, D, Hh, L = hidden_dim, dim, hidden_mlp_dim, n_flow_layers
    s_lstm = 1.0 / np.sqrt(H)
    u = lambda k, shape, s: jax.random.uniform(k, shape, jnp.float32, -s, s)
    return {
        "wih": u(ks[0], (D, 4 * H), s_lstm),
        "whh": u(ks[1], (H, 4 * H), s_lstm),
        "b":   u(ks[2], (1, 4 * H), s_lstm),
        "fw1": u(ks[3], (L, H + 1, Hh), 1.0 / np.sqrt(H + 1)),
        "fb1": u(ks[4], (L, 1, Hh), 1.0 / np.sqrt(H + 1)),
        "fw2": u(ks[5], (L, Hh, H), 1.0 / np.sqrt(Hh)),
        "fb2": u(ks[6], (L, 1, H), 1.0 / np.sqrt(Hh)),
        "fts": u(ks[7], (L, 1, H), 1.0),
    }


if __name__ == "__main__":
    # The original module builds ResNetFlow(dim=dim) but applies it to the hidden-dim state,
    # so it only runs when dim == hidden_dim; the demo uses D == H accordingly.
    B, T, D, H, L = 4, 16, 32, 32, 2
    key = jax.random.PRNGKey(0)
    kx, kt, kp = jax.random.split(key, 3)

    x = jax.random.normal(kx, (B, T, D), jnp.float32)
    t = jax.random.uniform(kt, (B, T, 1), jnp.float32, 0.05, 1.0)   # positive time increments
    params = init_params(kp, D, H, H, L)

    fn = jax.jit(functools.partial(
        continuous_lstm_layer, hidden_dim=H, n_flow_layers=L, time_chunk=8))
    out = jax.block_until_ready(fn(x, t, params))

    ref = reference(x, t, params, hidden_dim=H, n_flow_layers=L)
    np.testing.assert_allclose(np.asarray(out), np.asarray(ref), rtol=1e-5, atol=1e-5)

    print("KERNEL_OK")
</pallas_src>

<mosaic_0001>
module attributes {stable_mosaic.version = 11 : i64} {
  func.func @_continuous_lstm_kernel(%arg0: i32, %arg1: memref<32x128xf32, #tpu.memory_space<vmem>>, %arg2: memref<2x32x32xf32, #tpu.memory_space<vmem>>, %arg3: memref<2x32x32xf32, #tpu.memory_space<vmem>>, %arg4: memref<32x128xf32, #tpu.memory_space<vmem>>, %arg5: memref<2x32x32xf32, #tpu.memory_space<vmem>>, %arg6: memref<2x32x32xf32, #tpu.memory_space<vmem>>, %arg7: memref<2x1x32xf32, #tpu.memory_space<vmem>>, %arg8: memref<32x32xf32, #tpu.memory_space<vmem>>, %arg9: memref<4x32xf32, #tpu.memory_space<vmem>>, %arg10: memref<4x32xf32, #tpu.memory_space<vmem>>, %arg11: memref<32x32xf32, #tpu.memory_space<vmem>>) attributes {dimension_semantics = [#tpu.dimension_semantics<arbitrary>], iteration_bounds = array<i64: 2>, scalar_prefetch = 0 : i64, scratch_operands = 3 : i64, tpu.core_type = #tpu.core_type<tc>, window_params = [{transform_indices = @transform_0, window_bounds = array<i64: 32, 128>}, {transform_indices = @transform_1, window_bounds = array<i64: 2, 32, 32>}, {transform_indices = @transform_2, window_bounds = array<i64: 2, 32, 32>}, {pipeline_mode = #tpu.pipeline_mode<synchronous>, transform_indices = @transform_3, window_bounds = array<i64: 32, 128>}, {pipeline_mode = #tpu.pipeline_mode<synchronous>, transform_indices = @transform_4, window_bounds = array<i64: 2, 32, 32>}, {pipeline_mode = #tpu.pipeline_mode<synchronous>, transform_indices = @transform_5, window_bounds = array<i64: 2, 32, 32>}, {pipeline_mode = #tpu.pipeline_mode<synchronous>, transform_indices = @transform_6, window_bounds = array<i64: 2, 1, 32>}, {transform_indices = @transform_7, window_bounds = array<i64: 32, 32>}]} {
    %c0_i32 = arith.constant 0 : i32
    %0 = arith.cmpi eq, %arg0, %c0_i32 : i32
    %1 = arith.extui %0 : i1 to i32
    %c0_i32_0 = arith.constant 0 : i32
    %2 = arith.cmpi ne, %1, %c0_i32_0 : i32
    scf.if %2 {
      %cst_103 = arith.constant 0.000000e+00 : f32
      %278 = vector.broadcast %cst_103 : f32 to vector<4x32xf32>
      %c0_104 = arith.constant 0 : index
      %c0_105 = arith.constant 0 : index
      %279 = vector.load %arg9[%c0_104, %c0_105] : memref<4x32xf32, #tpu.memory_space<vmem>>, vector<4x32xf32>
      tpu.vector_store %arg9[%c0_104, %c0_105], %278 {strides = array<i32>} : memref<4x32xf32, #tpu.memory_space<vmem>>, vector<4x32xf32>,
      %cst_106 = arith.constant 0.000000e+00 : f32
      %280 = vector.broadcast %cst_106 : f32 to vector<4x32xf32>
      %c0_107 = arith.constant 0 : index
      %c0_108 = arith.constant 0 : index
      %281 = vector.load %arg10[%c0_107, %c0_108] : memref<4x32xf32, #tpu.memory_space<vmem>>, vector<4x32xf32>
      tpu.vector_store %arg10[%c0_107, %c0_108], %280 {strides = array<i32>} : memref<4x32xf32, #tpu.memory_space<vmem>>, vector<4x32xf32>,
    } else {
    }
    %c0 = arith.constant 0 : index
    %c0_1 = arith.constant 0 : index
    %3 = vector.load %arg4[%c0, %c0_1] : memref<32x128xf32, #tpu.memory_space<vmem>>, vector<32x128xf32>
    %c0_2 = arith.constant 0 : index
    %c0_3 = arith.constant 0 : index
    %4 = vector.load %arg9[%c0_2, %c0_3] : memref<4x32xf32, #tpu.memory_space<vmem>>, vector<4x32xf32>
    %c0_4 = arith.constant 0 : index
    %c0_5 = arith.constant 0 : index
    %5 = vector.load %arg10[%c0_4, %c0_5] : memref<4x32xf32, #tpu.memory_space<vmem>>, vector<4x32xf32>
    %c0_6 = arith.constant 0 : index
    %c0_7 = arith.constant 0 : index
    %6 = vector.load %arg11[%c0_6, %c0_7] : memref<32x32xf32, #tpu.memory_space<vmem>>, vector<4x32xf32>
    tpu.vector_store %arg11[%c0_6, %c0_7], %5 {strides = array<i32>} : memref<32x32xf32, #tpu.memory_space<vmem>>, vector<4x32xf32>,
    %c0_8 = arith.constant 0 : index
    %c0_9 = arith.constant 0 : index
    %7 = vector.load %arg1[%c0_8, %c0_9] : memref<32x128xf32, #tpu.memory_space<vmem>>, vector<4x128xf32>
    %cst = arith.constant dense<0.000000e+00> : vector<4x128xf32>
    %8 = tpu.matmul %4, %3, %cst {dimension_numbers = #tpu.dot_dimension_numbers<[1], [0], [0], [1], [0, 0, 1, 1], [], []>} : vector<4x32xf32>, vector<32x128xf32>, vector<4x128xf32> -> vector<4x128xf32>
    %9 = arith.addf %7, %8 : vector<4x128xf32>
    %10 = vector.extract_strided_slice %9 {offsets = [0, 0], sizes = [4, 32], strides = [1, 1]} : vector<4x128xf32> to vector<4x32xf32>
    %11 = arith.negf %10 : vector<4x32xf32>
    %12 = math.exp %11 : vector<4x32xf32>
    %cst_10 = arith.constant 1.000000e+00 : f32
    %13 = vector.broadcast %cst_10 : f32 to vector<4x32xf32>
    %14 = arith.addf %13, %12 : vector<4x32xf32>
    %15 = arith.divf %13, %14 : vector<4x32xf32>
    %16 = vector.extract_strided_slice %9 {offsets = [0, 32], sizes = [4, 32], strides = [1, 1]} : vector<4x128xf32> to vector<4x32xf32>
    %17 = arith.negf %16 : vector<4x32xf32>
    %18 = math.exp %17 : vector<4x32xf32>
    %cst_11 = arith.constant 1.000000e+00 : f32
    %19 = vector.broadcast %cst_11 : f32 to vector<4x32xf32>
    %20 = arith.addf %19, %18 : vector<4x32xf32>
    %21 = arith.divf %19, %20 : vector<4x32xf32>
    %22 = vector.extract_strided_slice %9 {offsets = [0, 64], sizes = [4, 32], strides = [1, 1]} : vector<4x128xf32> to vector<4x32xf32>
    %23 = math.tanh %22 : vector<4x32xf32>
    %24 = vector.extract_strided_slice %9 {offsets = [0, 96], sizes = [4, 32], strides = [1, 1]} : vector<4x128xf32> to vector<4x32xf32>
    %25 = arith.negf %24 : vector<4x32xf32>
    %26 = math.exp %25 : vector<4x32xf32>
    %cst_12 = arith.constant 1.000000e+00 : f32
    %27 = vector.broadcast %cst_12 : f32 to vector<4x32xf32>
    %28 = arith.addf %27, %26 : vector<4x32xf32>
    %29 = arith.divf %27, %28 : vector<4x32xf32>
    %30 = arith.mulf %21, %5 : vector<4x32xf32>
    %31 = arith.mulf %15, %23 : vector<4x32xf32>
    %32 = arith.addf %30, %31 : vector<4x32xf32>
    %33 = math.tanh %32 : vector<4x32xf32>
    %34 = arith.mulf %29, %33 : vector<4x32xf32>
    %c4 = arith.constant 4 : index
    %c0_13 = arith.constant 0 : index
    %35 = vector.load %arg11[%c4, %c0_13] : memref<32x32xf32, #tpu.memory_space<vmem>>, vector<4x32xf32>
    tpu.vector_store %arg11[%c4, %c0_13], %32 {strides = array<i32>} : memref<32x32xf32, #tpu.memory_space<vmem>>, vector<4x32xf32>,
    %c4_14 = arith.constant 4 : index
    %c0_15 = arith.constant 0 : index
    %36 = vector.load %arg1[%c4_14, %c0_15] : memref<32x128xf32, #tpu.memory_space<vmem>>, vector<4x128xf32>
    %cst_16 = arith.constant dense<0.000000e+00> : vector<4x128xf32>
    %37 = tpu.matmul %34, %3, %cst_16 {dimension_numbers = #tpu.dot_dimension_numbers<[1], [0], [0], [1], [0, 0, 1, 1], [], []>} : vector<4x32xf32>, vector<32x128xf32>, vector<4x128xf32> -> vector<4x128xf32>
    %38 = arith.addf %36, %37 : vector<4x128xf32>
    %39 = vector.extract_strided_slice %38 {offsets = [0, 0], sizes = [4, 32], strides = [1, 1]} : vector<4x128xf32> to vector<4x32xf32>
    %40 = arith.negf %39 : vector<4x32xf32>
    %41 = math.exp %40 : vector<4x32xf32>
    %cst_17 = arith.constant 1.000000e+00 : f32
    %42 = vector.broadcast %cst_17 : f32 to vector<4x32xf32>
    %43 = arith.addf %42, %41 : vector<4x32xf32>
    %44 = arith.divf %42, %43 : vector<4x32xf32>
    %45 = vector.extract_strided_slice %38 {offsets = [0, 32], sizes = [4, 32], strides = [1, 1]} : vector<4x128xf32> to vector<4x32xf32>
    %46 = arith.negf %45 : vector<4x32xf32>
    %47 = math.exp %46 : vector<4x32xf32>
    %cst_18 = arith.constant 1.000000e+00 : f32
    %48 = vector.broadcast %cst_18 : f32 to vector<4x32xf32>
    %49 = arith.addf %48, %47 : vector<4x32xf32>
    %50 = arith.divf %48, %49 : vector<4x32xf32>
    %51 = vector.extract_strided_slice %38 {offsets = [0, 64], sizes = [4, 32], strides = [1, 1]} : vector<4x128xf32> to vector<4x32xf32>
    %52 = math.tanh %51 : vector<4x32xf32>
    %53 = vector.extract_strided_slice %38 {offsets = [0, 96], sizes = [4, 32], strides = [1, 1]} : vector<4x128xf32> to vector<4x32xf32>
    %54 = arith.negf %53 : vector<4x32xf32>
    %55 = math.exp %54 : vector<4x32xf32>
    %cst_19 = arith.constant 1.000000e+00 : f32
    %56 = vector.broadcast %cst_19 : f32 to vector<4x32xf32>
    %57 = arith.addf %56, %55 : vector<4x32xf32>
    %58 = arith.divf %56, %57 : vector<4x32xf32>
    %59 = arith.mulf %50, %32 : vector<4x32xf32>
    %60 = arith.mulf %44, %52 : vector<4x32xf32>
    %61 = arith.addf %59, %60 : vector<4x32xf32>
    %62 = math.tanh %61 : vector<4x32xf32>
    %63 = arith.mulf %58, %62 : vector<4x32xf32>
    %c8 = arith.constant 8 : index
    %c0_20 = arith.constant 0 : index
    %64 = vector.load %arg11[%c8, %c0_20] : memref<32x32xf32, #tpu.memory_space<vmem>>, vector<4x32xf32>
    tpu.vector_store %arg11[%c8, %c0_20], %61 {strides = array<i32>} : memref<32x32xf32, #tpu.memory_space<vmem>>, vector<4x32xf32>,
    %c8_21 = arith.constant 8 : index
    %c0_22 = arith.constant 0 : index
    %65 = vector.load %arg1[%c8_21, %c0_22] : memref<32x128xf32, #tpu.memory_space<vmem>>, vector<4x128xf32>
    %cst_23 = arith.constant dense<0.000000e+00> : vector<4x128xf32>
    %66 = tpu.matmul %63, %3, %cst_23 {dimension_numbers = #tpu.dot_dimension_numbers<[1], [0], [0], [1], [0, 0, 1, 1], [], []>} : vector<4x32xf32>, vector<32x128xf32>, vector<4x128xf32> -> vector<4x128xf32>
    %67 = arith.addf %65, %66 : vector<4x128xf32>
    %68 = vector.extract_strided_slice %67 {offsets = [0, 0], sizes = [4, 32], strides = [1, 1]} : vector<4x128xf32> to vector<4x32xf32>
    %69 = arith.negf %68 : vector<4x32xf32>
    %70 = math.exp %69 : vector<4x32xf32>
    %cst_24 = arith.constant 1.000000e+00 : f32
    %71 = vector.broadcast %cst_24 : f32 to vector<4x32xf32>
    %72 = arith.addf %71, %70 : vector<4x32xf32>
    %73 = arith.divf %71, %72 : vector<4x32xf32>
    %74 = vector.extract_strided_slice %67 {offsets = [0, 32], sizes = [4, 32], strides = [1, 1]} : vector<4x128xf32> to vector<4x32xf32>
    %75 = arith.negf %74 : vector<4x32xf32>
    %76 = math.exp %75 : vector<4x32xf32>
    %cst_25 = arith.constant 1.000000e+00 : f32
    %77 = vector.broadcast %cst_25 : f32 to vector<4x32xf32>
    %78 = arith.addf %77, %76 : vector<4x32xf32>
    %79 = arith.divf %77, %78 : vector<4x32xf32>
    %80 = vector.extract_strided_slice %67 {offsets = [0, 64], sizes = [4, 32], strides = [1, 1]} : vector<4x128xf32> to vector<4x32xf32>
    %81 = math.tanh %80 : vector<4x32xf32>
    %82 = vector.extract_strided_slice %67 {offsets = [0, 96], sizes = [4, 32], strides = [1, 1]} : vector<4x128xf32> to vector<4x32xf32>
    %83 = arith.negf %82 : vector<4x32xf32>
    %84 = math.exp %83 : vector<4x32xf32>
    %cst_26 = arith.constant 1.000000e+00 : f32
    %85 = vector.broadcast %cst_26 : f32 to vector<4x32xf32>
    %86 = arith.addf %85, %84 : vector<4x32xf32>
    %87 = arith.divf %85, %86 : vector<4x32xf32>
    %88 = arith.mulf %79, %61 : vector<4x32xf32>
    %89 = arith.mulf %73, %81 : vector<4x32xf32>
    %90 = arith.addf %88, %89 : vector<4x32xf32>
    %91 = math.tanh %90 : vector<4x32xf32>
    %92 = arith.mulf %87, %91 : vector<4x32xf32>
    %c12 = arith.constant 12 : index
    %c0_27 = arith.constant 0 : index
    %93 = vector.load %arg11[%c12, %c0_27] : memref<32x32xf32, #tpu.memory_space<vmem>>, vector<4x32xf32>
    tpu.vector_store %arg11[%c12, %c0_27], %90 {strides = array<i32>} : memref<32x32xf32, #tpu.memory_space<vmem>>, vector<4x32xf32>,
    %c12_28 = arith.constant 12 : index
    %c0_29 = arith.constant 0 : index
    %94 = vector.load %arg1[%c12_28, %c0_29] : memref<32x128xf32, #tpu.memory_space<vmem>>, vector<4x128xf32>
    %cst_30 = arith.constant dense<0.000000e+00> : vector<4x128xf32>
    %95 = tpu.matmul %92, %3, %cst_30 {dimension_numbers = #tpu.dot_dimension_numbers<[1], [0], [0], [1], [0, 0, 1, 1], [], []>} : vector<4x32xf32>, vector<32x128xf32>, vector<4x128xf32> -> vector<4x128xf32>
    %96 = arith.addf %94, %95 : vector<4x128xf32>
    %97 = vector.extract_strided_slice %96 {offsets = [0, 0], sizes = [4, 32], strides = [1, 1]} : vector<4x128xf32> to vector<4x32xf32>
    %98 = arith.negf %97 : vector<4x32xf32>
    %99 = math.exp %98 : vector<4x32xf32>
    %cst_31 = arith.constant 1.000000e+00 : f32
    %100 = vector.broadcast %cst_31 : f32 to vector<4x32xf32>
    %101 = arith.addf %100, %99 : vector<4x32xf32>
    %102 = arith.divf %100, %101 : vector<4x32xf32>
    %103 = vector.extract_strided_slice %96 {offsets = [0, 32], sizes = [4, 32], strides = [1, 1]} : vector<4x128xf32> to vector<4x32xf32>
    %104 = arith.negf %103 : vector<4x32xf32>
    %105 = math.exp %104 : vector<4x32xf32>
    %cst_32 = arith.constant 1.000000e+00 : f32
    %106 = vector.broadcast %cst_32 : f32 to vector<4x32xf32>
    %107 = arith.addf %106, %105 : vector<4x32xf32>
    %108 = arith.divf %106, %107 : vector<4x32xf32>
    %109 = vector.extract_strided_slice %96 {offsets = [0, 64], sizes = [4, 32], strides = [1, 1]} : vector<4x128xf32> to vector<4x32xf32>
    %110 = math.tanh %109 : vector<4x32xf32>
    %111 = vector.extract_strided_slice %96 {offsets = [0, 96], sizes = [4, 32], strides = [1, 1]} : vector<4x128xf32> to vector<4x32xf32>
    %112 = arith.negf %111 : vector<4x32xf32>
    %113 = math.exp %112 : vector<4x32xf32>
    %cst_33 = arith.constant 1.000000e+00 : f32
    %114 = vector.broadcast %cst_33 : f32 to vector<4x32xf32>
    %115 = arith.addf %114, %113 : vector<4x32xf32>
    %116 = arith.divf %114, %115 : vector<4x32xf32>
    %117 = arith.mulf %108, %90 : vector<4x32xf32>
    %118 = arith.mulf %102, %110 : vector<4x32xf32>
    %119 = arith.addf %117, %118 : vector<4x32xf32>
    %120 = math.tanh %119 : vector<4x32xf32>
    %121 = arith.mulf %116, %120 : vector<4x32xf32>
    %c16 = arith.constant 16 : index
    %c0_34 = arith.constant 0 : index
    %122 = vector.load %arg11[%c16, %c0_34] : memref<32x32xf32, #tpu.memory_space<vmem>>, vector<4x32xf32>
    tpu.vector_store %arg11[%c16, %c0_34], %119 {strides = array<i32>} : memref<32x32xf32, #tpu.memory_space<vmem>>, vector<4x32xf32>,
    %c16_35 = arith.constant 16 : index
    %c0_36 = arith.constant 0 : index
    %123 = vector.load %arg1[%c16_35, %c0_36] : memref<32x128xf32, #tpu.memory_space<vmem>>, vector<4x128xf32>
    %cst_37 = arith.constant dense<0.000000e+00> : vector<4x128xf32>
    %124 = tpu.matmul %121, %3, %cst_37 {dimension_numbers = #tpu.dot_dimension_numbers<[1], [0], [0], [1], [0, 0, 1, 1], [], []>} : vector<4x32xf32>, vector<32x128xf32>, vector<4x128xf32> -> vector<4x128xf32>
    %125 = arith.addf %123, %124 : vector<4x128xf32>
    %126 = vector.extract_strided_slice %125 {offsets = [0, 0], sizes = [4, 32], strides = [1, 1]} : vector<4x128xf32> to vector<4x32xf32>
    %127 = arith.negf %126 : vector<4x32xf32>
    %128 = math.exp %127 : vector<4x32xf32>
    %cst_38 = arith.constant 1.000000e+00 : f32
    %129 = vector.broadcast %cst_38 : f32 to vector<4x32xf32>
    %130 = arith.addf %129, %128 : vector<4x32xf32>
    %131 = arith.divf %129, %130 : vector<4x32xf32>
    %132 = vector.extract_strided_slice %125 {offsets = [0, 32], sizes = [4, 32], strides = [1, 1]} : vector<4x128xf32> to vector<4x32xf32>
    %133 = arith.negf %132 : vector<4x32xf32>
    %134 = math.exp %133 : vector<4x32xf32>
    %cst_39 = arith.constant 1.000000e+00 : f32
    %135 = vector.broadcast %cst_39 : f32 to vector<4x32xf32>
    %136 = arith.addf %135, %134 : vector<4x32xf32>
    %137 = arith.divf %135, %136 : vector<4x32xf32>
    %138 = vector.extract_strided_slice %125 {offsets = [0, 64], sizes = [4, 32], strides = [1, 1]} : vector<4x128xf32> to vector<4x32xf32>
    %139 = math.tanh %138 : vector<4x32xf32>
    %140 = vector.extract_strided_slice %125 {offsets = [0, 96], sizes = [4, 32], strides = [1, 1]} : vector<4x128xf32> to vector<4x32xf32>
    %141 = arith.negf %140 : vector<4x32xf32>
    %142 = math.exp %141 : vector<4x32xf32>
    %cst_40 = arith.constant 1.000000e+00 : f32
    %143 = vector.broadcast %cst_40 : f32 to vector<4x32xf32>
    %144 = arith.addf %143, %142 : vector<4x32xf32>
    %145 = arith.divf %143, %144 : vector<4x32xf32>
    %146 = arith.mulf %137, %119 : vector<4x32xf32>
    %147 = arith.mulf %131, %139 : vector<4x32xf32>
    %148 = arith.addf %146, %147 : vector<4x32xf32>
    %149 = math.tanh %148 : vector<4x32xf32>
    %150 = arith.mulf %145, %149 : vector<4x32xf32>
    %c20 = arith.constant 20 : index
    %c0_41 = arith.constant 0 : index
    %151 = vector.load %arg11[%c20, %c0_41] : memref<32x32xf32, #tpu.memory_space<vmem>>, vector<4x32xf32>
    tpu.vector_store %arg11[%c20, %c0_41], %148 {strides = array<i32>} : memref<32x32xf32, #tpu.memory_space<vmem>>, vector<4x32xf32>,
    %c20_42 = arith.constant 20 : index
    %c0_43 = arith.constant 0 : index
    %152 = vector.load %arg1[%c20_42, %c0_43] : memref<32x128xf32, #tpu.memory_space<vmem>>, vector<4x128xf32>
    %cst_44 = arith.constant dense<0.000000e+00> : vector<4x128xf32>
    %153 = tpu.matmul %150, %3, %cst_44 {dimension_numbers = #tpu.dot_dimension_numbers<[1], [0], [0], [1], [0, 0, 1, 1], [], []>} : vector<4x32xf32>, vector<32x128xf32>, vector<4x128xf32> -> vector<4x128xf32>
    %154 = arith.addf %152, %153 : vector<4x128xf32>
    %155 = vector.extract_strided_slice %154 {offsets = [0, 0], sizes = [4, 32], strides = [1, 1]} : vector<4x128xf32> to vector<4x32xf32>
    %156 = arith.negf %155 : vector<4x32xf32>
    %157 = math.exp %156 : vector<4x32xf32>
    %cst_45 = arith.constant 1.000000e+00 : f32
    %158 = vector.broadcast %cst_45 : f32 to vector<4x32xf32>
    %159 = arith.addf %158, %157 : vector<4x32xf32>
    %160 = arith.divf %158, %159 : vector<4x32xf32>
    %161 = vector.extract_strided_slice %154 {offsets = [0, 32], sizes = [4, 32], strides = [1, 1]} : vector<4x128xf32> to vector<4x32xf32>
    %162 = arith.negf %161 : vector<4x32xf32>
    %163 = math.exp %162 : vector<4x32xf32>
    %cst_46 = arith.constant 1.000000e+00 : f32
    %164 = vector.broadcast %cst_46 : f32 to vector<4x32xf32>
    %165 = arith.addf %164, %163 : vector<4x32xf32>
    %166 = arith.divf %164, %165 : vector<4x32xf32>
    %167 = vector.extract_strided_slice %154 {offsets = [0, 64], sizes = [4, 32], strides = [1, 1]} : vector<4x128xf32> to vector<4x32xf32>
    %168 = math.tanh %167 : vector<4x32xf32>
    %169 = vector.extract_strided_slice %154 {offsets = [0, 96], sizes = [4, 32], strides = [1, 1]} : vector<4x128xf32> to vector<4x32xf32>
    %170 = arith.negf %169 : vector<4x32xf32>
    %171 = math.exp %170 : vector<4x32xf32>
    %cst_47 = arith.constant 1.000000e+00 : f32
    %172 = vector.broadcast %cst_47 : f32 to vector<4x32xf32>
    %173 = arith.addf %172, %171 : vector<4x32xf32>
    %174 = arith.divf %172, %173 : vector<4x32xf32>
    %175 = arith.mulf %166, %148 : vector<4x32xf32>
    %176 = arith.mulf %160, %168 : vector<4x32xf32>
    %177 = arith.addf %175, %176 : vector<4x32xf32>
    %178 = math.tanh %177 : vector<4x32xf32>
    %179 = arith.mulf %174, %178 : vector<4x32xf32>
    %c24 = arith.constant 24 : index
    %c0_48 = arith.constant 0 : index
    %180 = vector.load %arg11[%c24, %c0_48] : memref<32x32xf32, #tpu.memory_space<vmem>>, vector<4x32xf32>
    tpu.vector_store %arg11[%c24, %c0_48], %177 {strides = array<i32>} : memref<32x32xf32, #tpu.memory_space<vmem>>, vector<4x32xf32>,
    %c24_49 = arith.constant 24 : index
    %c0_50 = arith.constant 0 : index
    %181 = vector.load %arg1[%c24_49, %c0_50] : memref<32x128xf32, #tpu.memory_space<vmem>>, vector<4x128xf32>
    %cst_51 = arith.constant dense<0.000000e+00> : vector<4x128xf32>
    %182 = tpu.matmul %179, %3, %cst_51 {dimension_numbers = #tpu.dot_dimension_numbers<[1], [0], [0], [1], [0, 0, 1, 1], [], []>} : vector<4x32xf32>, vector<32x128xf32>, vector<4x128xf32> -> vector<4x128xf32>
    %183 = arith.addf %181, %182 : vector<4x128xf32>
    %184 = vector.extract_strided_slice %183 {offsets = [0, 0], sizes = [4, 32], strides = [1, 1]} : vector<4x128xf32> to vector<4x32xf32>
    %185 = arith.negf %184 : vector<4x32xf32>
    %186 = math.exp %185 : vector<4x32xf32>
    %cst_52 = arith.constant 1.000000e+00 : f32
    %187 = vector.broadcast %cst_52 : f32 to vector<4x32xf32>
    %188 = arith.addf %187, %186 : vector<4x32xf32>
    %189 = arith.divf %187, %188 : vector<4x32xf32>
    %190 = vector.extract_strided_slice %183 {offsets = [0, 32], sizes = [4, 32], strides = [1, 1]} : vector<4x128xf32> to vector<4x32xf32>
    %191 = arith.negf %190 : vector<4x32xf32>
    %192 = math.exp %191 : vector<4x32xf32>
    %cst_53 = arith.constant 1.000000e+00 : f32
    %193 = vector.broadcast %cst_53 : f32 to vector<4x32xf32>
    %194 = arith.addf %193, %192 : vector<4x32xf32>
    %195 = arith.divf %193, %194 : vector<4x32xf32>
    %196 = vector.extract_strided_slice %183 {offsets = [0, 64], sizes = [4, 32], strides = [1, 1]} : vector<4x128xf32> to vector<4x32xf32>
    %197 = math.tanh %196 : vector<4x32xf32>
    %198 = vector.extract_strided_slice %183 {offsets = [0, 96], sizes = [4, 32], strides = [1, 1]} : vector<4x128xf32> to vector<4x32xf32>
    %199 = arith.negf %198 : vector<4x32xf32>
    %200 = math.exp %199 : vector<4x32xf32>
    %cst_54 = arith.constant 1.000000e+00 : f32
    %201 = vector.broadcast %cst_54 : f32 to vector<4x32xf32>
    %202 = arith.addf %201, %200 : vector<4x32xf32>
    %203 = arith.divf %201, %202 : vector<4x32xf32>
    %204 = arith.mulf %195, %177 : vector<4x32xf32>
    %205 = arith.mulf %189, %197 : vector<4x32xf32>
    %206 = arith.addf %204, %205 : vector<4x32xf32>
    %207 = math.tanh %206 : vector<4x32xf32>
    %208 = arith.mulf %203, %207 : vector<4x32xf32>
    %c28 = arith.constant 28 : index
    %c0_55 = arith.constant 0 : index
    %209 = vector.load %arg11[%c28, %c0_55] : memref<32x32xf32, #tpu.memory_space<vmem>>, vector<4x32xf32>
    tpu.vector_store %arg11[%c28, %c0_55], %206 {strides = array<i32>} : memref<32x32xf32, #tpu.memory_space<vmem>>, vector<4x32xf32>,
    %c28_56 = arith.constant 28 : index
    %c0_57 = arith.constant 0 : index
    %210 = vector.load %arg1[%c28_56, %c0_57] : memref<32x128xf32, #tpu.memory_space<vmem>>, vector<4x128xf32>
    %cst_58 = arith.constant dense<0.000000e+00> : vector<4x128xf32>
    %211 = tpu.matmul %208, %3, %cst_58 {dimension_numbers = #tpu.dot_dimension_numbers<[1], [0], [0], [1], [0, 0, 1, 1], [], []>} : vector<4x32xf32>, vector<32x128xf32>, vector<4x128xf32> -> vector<4x128xf32>
    %212 = arith.addf %210, %211 : vector<4x128xf32>
    %213 = vector.extract_strided_slice %212 {offsets = [0, 0], sizes = [4, 32], strides = [1, 1]} : vector<4x128xf32> to vector<4x32xf32>
    %214 = arith.negf %213 : vector<4x32xf32>
    %215 = math.exp %214 : vector<4x32xf32>
    %cst_59 = arith.constant 1.000000e+00 : f32
    %216 = vector.broadcast %cst_59 : f32 to vector<4x32xf32>
    %217 = arith.addf %216, %215 : vector<4x32xf32>
    %218 = arith.divf %216, %217 : vector<4x32xf32>
    %219 = vector.extract_strided_slice %212 {offsets = [0, 32], sizes = [4, 32], strides = [1, 1]} : vector<4x128xf32> to vector<4x32xf32>
    %220 = arith.negf %219 : vector<4x32xf32>
    %221 = math.exp %220 : vector<4x32xf32>
    %cst_60 = arith.constant 1.000000e+00 : f32
    %222 = vector.broadcast %cst_60 : f32 to vector<4x32xf32>
    %223 = arith.addf %222, %221 : vector<4x32xf32>
    %224 = arith.divf %222, %223 : vector<4x32xf32>
    %225 = vector.extract_strided_slice %212 {offsets = [0, 64], sizes = [4, 32], strides = [1, 1]} : vector<4x128xf32> to vector<4x32xf32>
    %226 = math.tanh %225 : vector<4x32xf32>
    %227 = vector.extract_strided_slice %212 {offsets = [0, 96], sizes = [4, 32], strides = [1, 1]} : vector<4x128xf32> to vector<4x32xf32>
    %228 = arith.negf %227 : vector<4x32xf32>
    %229 = math.exp %228 : vector<4x32xf32>
    %cst_61 = arith.constant 1.000000e+00 : f32
    %230 = vector.broadcast %cst_61 : f32 to vector<4x32xf32>
    %231 = arith.addf %230, %229 : vector<4x32xf32>
    %232 = arith.divf %230, %231 : vector<4x32xf32>
    %233 = arith.mulf %224, %206 : vector<4x32xf32>
    %234 = arith.mulf %218, %226 : vector<4x32xf32>
    %235 = arith.addf %233, %234 : vector<4x32xf32>
    %236 = math.tanh %235 : vector<4x32xf32>
    %237 = arith.mulf %232, %236 : vector<4x32xf32>
    %c0_62 = arith.constant 0 : index
    %c0_63 = arith.constant 0 : index
    %238 = vector.load %arg9[%c0_62, %c0_63] : memref<4x32xf32, #tpu.memory_space<vmem>>, vector<4x32xf32>
    tpu.vector_store %arg9[%c0_62, %c0_63], %237 {strides = array<i32>} : memref<4x32xf32, #tpu.memory_space<vmem>>, vector<4x32xf32>,
    %c0_64 = arith.constant 0 : index
    %c0_65 = arith.constant 0 : index
    %239 = vector.load %arg10[%c0_64, %c0_65] : memref<4x32xf32, #tpu.memory_space<vmem>>, vector<4x32xf32>
    tpu.vector_store %arg10[%c0_64, %c0_65], %235 {strides = array<i32>} : memref<4x32xf32, #tpu.memory_space<vmem>>, vector<4x32xf32>,
    %c0_66 = arith.constant 0 : index
    %c0_67 = arith.constant 0 : index
    %240 = vector.load %arg11[%c0_66, %c0_67] : memref<32x32xf32, #tpu.memory_space<vmem>>, vector<32x32xf32>
    %c0_68 = arith.constant 0 : index
    %c0_69 = arith.constant 0 : index
    %c0_70 = arith.constant 0 : index
    %241 = vector.load %arg5[%c0_68, %c0_69, %c0_70] : memref<2x32x32xf32, #tpu.memory_space<vmem>>, vector<1x32x32xf32>
    %242 = vector.shape_cast %241 : vector<1x32x32xf32> to vector<32x32xf32>
    %cst_71 = arith.constant dense<0.000000e+00> : vector<32x32xf32>
    %243 = tpu.matmul %240, %242, %cst_71 {dimension_numbers = #tpu.dot_dimension_numbers<[1], [0], [0], [1], [0, 0, 1, 1], [], []>} : vector<32x32xf32>, vector<32x32xf32>, vector<32x32xf32> -> vector<32x32xf32>
    %c0_72 = arith.constant 0 : index
    %c0_73 = arith.constant 0 : index
    %c0_74 = arith.constant 0 : index
    %244 = vector.load %arg2[%c0_72, %c0_73, %c0_74] : memref<2x32x32xf32, #tpu.memory_space<vmem>>, vector<1x32x32xf32>
    %245 = vector.shape_cast %244 : vector<1x32x32xf32> to vector<32x32xf32>
    %246 = arith.addf %243, %245 : vector<32x32xf32>
    %247 = math.tanh %246 : vector<32x32xf32>
    %c0_75 = arith.constant 0 : index
    %c0_76 = arith.constant 0 : index
    %c0_77 = arith.constant 0 : index
    %248 = vector.load %arg6[%c0_75, %c0_76, %c0_77] : memref<2x32x32xf32, #tpu.memory_space<vmem>>, vector<1x32x32xf32>
    %249 = vector.shape_cast %248 : vector<1x32x32xf32> to vector<32x32xf32>
    %cst_78 = arith.constant dense<0.000000e+00> : vector<32x32xf32>
    %250 = tpu.matmul %247, %249, %cst_78 {dimension_numbers = #tpu.dot_dimension_numbers<[1], [0], [0], [1], [0, 0, 1, 1], [], []>} : vector<32x32xf32>, vector<32x32xf32>, vector<32x32xf32> -> vector<32x32xf32>
    %c0_79 = arith.constant 0 : index
    %c0_80 = arith.constant 0 : index
    %c0_81 = arith.constant 0 : index
    %251 = vector.load %arg7[%c0_79, %c0_80, %c0_81] : memref<2x1x32xf32, #tpu.memory_space<vmem>>, vector<1x1x32xf32>
    %252 = vector.shape_cast %251 : vector<1x1x32xf32> to vector<1x32xf32>
    %253 = vector.broadcast %252 : vector<1x32xf32> to vector<32x32xf32>
    %254 = arith.addf %250, %253 : vector<32x32xf32>
    %c0_82 = arith.constant 0 : index
    %c0_83 = arith.constant 0 : index
    %c0_84 = arith.constant 0 : index
    %255 = vector.load %arg3[%c0_82, %c0_83, %c0_84] : memref<2x32x32xf32, #tpu.memory_space<vmem>>, vector<1x32x32xf32>
    %256 = vector.shape_cast %255 : vector<1x32x32xf32> to vector<32x32xf32>
    %257 = arith.mulf %256, %254 : vector<32x32xf32>
    %258 = arith.addf %240, %257 : vector<32x32xf32>
    %c1 = arith.constant 1 : index
    %c0_85 = arith.constant 0 : index
    %c0_86 = arith.constant 0 : index
    %259 = vector.load %arg5[%c1, %c0_85, %c0_86] : memref<2x32x32xf32, #tpu.memory_space<vmem>>, vector<1x32x32xf32>
    %260 = vector.shape_cast %259 : vector<1x32x32xf32> to vector<32x32xf32>
    %cst_87 = arith.constant dense<0.000000e+00> : vector<32x32xf32>
    %261 = tpu.matmul %258, %260, %cst_87 {dimension_numbers = #tpu.dot_dimension_numbers<[1], [0], [0], [1], [0, 0, 1, 1], [], []>} : vector<32x32xf32>, vector<32x32xf32>, vector<32x32xf32> -> vector<32x32xf32>
    %c1_88 = arith.constant 1 : index
    %c0_89 = arith.constant 0 : index
    %c0_90 = arith.constant 0 : index
    %262 = vector.load %arg2[%c1_88, %c0_89, %c0_90] : memref<2x32x32xf32, #tpu.memory_space<vmem>>, vector<1x32x32xf32>
    %263 = vector.shape_cast %262 : vector<1x32x32xf32> to vector<32x32xf32>
    %264 = arith.addf %261, %263 : vector<32x32xf32>
    %265 = math.tanh %264 : vector<32x32xf32>
    %c1_91 = arith.constant 1 : index
    %c0_92 = arith.constant 0 : index
    %c0_93 = arith.constant 0 : index
    %266 = vector.load %arg6[%c1_91, %c0_92, %c0_93] : memref<2x32x32xf32, #tpu.memory_space<vmem>>, vector<1x32x32xf32>
    %267 = vector.shape_cast %266 : vector<1x32x32xf32> to vector<32x32xf32>
    %cst_94 = arith.constant dense<0.000000e+00> : vector<32x32xf32>
    %268 = tpu.matmul %265, %267, %cst_94 {dimension_numbers = #tpu.dot_dimension_numbers<[1], [0], [0], [1], [0, 0, 1, 1], [], []>} : vector<32x32xf32>, vector<32x32xf32>, vector<32x32xf32> -> vector<32x32xf32>
    %c1_95 = arith.constant 1 : index
    %c0_96 = arith.constant 0 : index
    %c0_97 = arith.constant 0 : index
    %269 = vector.load %arg7[%c1_95, %c0_96, %c0_97] : memref<2x1x32xf32, #tpu.memory_space<vmem>>, vector<1x1x32xf32>
    %270 = vector.shape_cast %269 : vector<1x1x32xf32> to vector<1x32xf32>
    %271 = vector.broadcast %270 : vector<1x32xf32> to vector<32x32xf32>
    %272 = arith.addf %268, %271 : vector<32x32xf32>
    %c1_98 = arith.constant 1 : index
    %c0_99 = arith.constant 0 : index
    %c0_100 = arith.constant 0 : index
    %273 = vector.load %arg3[%c1_98, %c0_99, %c0_100] : memref<2x32x32xf32, #tpu.memory_space<vmem>>, vector<1x32x32xf32>
    %274 = vector.shape_cast %273 : vector<1x32x32xf32> to vector<32x32xf32>
    %275 = arith.mulf %274, %272 : vector<32x32xf32>
    %276 = arith.addf %258, %275 : vector<32x32xf32>
    %c0_101 = arith.constant 0 : index
    %c0_102 = arith.constant 0 : index
    %277 = vector.load %arg8[%c0_101, %c0_102] : memref<32x32xf32, #tpu.memory_space<vmem>>, vector<32x32xf32>
    tpu.vector_store %arg8[%c0_101, %c0_102], %276 {strides = array<i32>} : memref<32x32xf32, #tpu.memory_space<vmem>>, vector<32x32xf32>,
    return
  }
  func.func @transform_0(%arg0: i32) -> (i32, i32) {
    %c0_i32 = arith.constant 0 : i32
    %c0_i32_0 = arith.constant 0 : i32
    return %arg0, %c0_i32 : i32, i32
  }
  func.func @transform_1(%arg0: i32) -> (i32, i32, i32) {
    %c0_i32 = arith.constant 0 : i32
    %c0_i32_0 = arith.constant 0 : i32
    %c0_i32_1 = arith.constant 0 : i32
    return %c0_i32, %arg0, %c0_i32_0 : i32, i32, i32
  }
  func.func @transform_2(%arg0: i32) -> (i32, i32, i32) {
    %c0_i32 = arith.constant 0 : i32
    %c0_i32_0 = arith.constant 0 : i32
    %c0_i32_1 = arith.constant 0 : i32
    return %c0_i32, %arg0, %c0_i32_0 : i32, i32, i32
  }
  func.func @transform_3(%arg0: i32) -> (i32, i32) {
    %c0_i32 = arith.constant 0 : i32
    %c0_i32_0 = arith.constant 0 : i32
    %c0_i32_1 = arith.constant 0 : i32
    return %c0_i32, %c0_i32_0 : i32, i32
  }
  func.func @transform_4(%arg0: i32) -> (i32, i32, i32) {
    %c0_i32 = arith.constant 0 : i32
    %c0_i32_0 = arith.constant 0 : i32
    %c0_i32_1 = arith.constant 0 : i32
    %c0_i32_2 = arith.constant 0 : i32
    return %c0_i32, %c0_i32_0, %c0_i32_1 : i32, i32, i32
  }
  func.func @transform_5(%arg0: i32) -> (i32, i32, i32) {
    %c0_i32 = arith.constant 0 : i32
    %c0_i32_0 = arith.constant 0 : i32
    %c0_i32_1 = arith.constant 0 : i32
    %c0_i32_2 = arith.constant 0 : i32
    return %c0_i32, %c0_i32_0, %c0_i32_1 : i32, i32, i32
  }
  func.func @transform_6(%arg0: i32) -> (i32, i32, i32) {
    %c0_i32 = arith.constant 0 : i32
    %c0_i32_0 = arith.constant 0 : i32
    %c0_i32_1 = arith.constant 0 : i32
    %c0_i32_2 = arith.constant 0 : i32
    return %c0_i32, %c0_i32_0, %c0_i32_1 : i32, i32, i32
  }
  func.func @transform_7(%arg0: i32) -> (i32, i32) {
    %c0_i32 = arith.constant 0 : i32
    %c0_i32_0 = arith.constant 0 : i32
    return %arg0, %c0_i32 : i32, i32
  }
}

</mosaic_0001>

<bundles_post_ra>
// kernel: continuous_lstm_layer.1
= control target key start
LH: loop header
LB: loop body
LE: loop exit
PB: predicated region body
PF: predicated region fallthrough
CT: control target
= control target key end

     0   :  { %s2355_s24 = smov 0   ;;  %s2357_s25 = smov 0   ;;  %s2751_s0 = inlined_call_operand.vmem [shape: f32[64,128], index: 0, kind: input, shape index: {}]   ;;  %s2752_s1 = inlined_call_operand.vmem [shape: f32[2,64,32], index: 1, kind: input, shape index: {}]   ;;  %s2753_s2 = inlined_call_operand.vmem [shape: f32[2,64,32], index: 2, kind: input, shape index: {}]   ;;  %s2754_s3 = inlined_call_operand.vmem [shape: f32[32,128], index: 3, kind: input, shape index: {}]   ;;  %s2755_s4 = inlined_call_operand.vmem [shape: f32[2,32,32], index: 4, kind: input, shape index: {}]   ;;  %s2756_s5 = inlined_call_operand.vmem [shape: f32[2,32,32], index: 5, kind: input, shape index: {}]   ;;  %s2757_s6 = inlined_call_operand.vmem [shape: f32[2,1,32], index: 6, kind: input, shape index: {}]   ;;  %s2758_s7 = inlined_call_operand.vmem [shape: f32[64,32], index: 7, kind: output, shape index: {}]  }
   0x1   :  { %s2359_s26 = smov 0  }
   0x2 LB: > { %s1886_s27 = sadd.s32 4294967295, %s2307_s26   ;;  %s2372_s28 = sadd.s32 1, %s2307_s26   ;;  %s2307_s26 = sphi %s2359_s26, %s2762_s26   ;;  %s2303_s25 = sphi %s2357_s25, %s2761_s25   ;;  %s2299_s24 = sphi %s2355_s24, %s2760_s24  }
   0x3   : > { %s47_s29 = ssub.s32 %s2307_s26, %s2372_s28  ;;  %s50_s30 = sadd.s32 1, %s2303_s25 }
   0x4   : > { %p48_p0 = scmp.eq.s32.totalorder %s47_s29, 0  ;;  %p57_p1 = scmp.ne.s32.totalorder %s2303_s25, %s2299_s24 }
   0x5   : > { %p58_p2 = scmp.eq.s32.totalorder %s2307_s26, 0  ;;  %p1889_p4 = scmp.ge.s32.totalorder %s2307_s26, 2 }
   0x6   : > { %s2381_s8 = scalar_select %p48_p0, %s2303_s25, %s50_s30  }
   0x7   : > { %p2383_p3 = por %p58_p2, %p57_p1  ;;  %231 = sbr.rel (%p1889_p4) target bundleno = 28 (0x1c), region = 32 }
   0xc   : > { %243 = sbr.rel (!%p2383_p3) target bundleno = 20 (0x14), region = 40  ;;  %s245_s10 = sand.u32 (%p2383_p3), 1, %s2303_s25  }
   0xd   : > { %s1957_s11 = sshll.u32 (%p2383_p3), %s2307_s26, 5  ;;  %s1890_s12 = sshll.u32 (%p2383_p3), %s245_s10, 6 }
   0xe   : > { %s250_s15 = scalar_lea.vmem (%p2383_p3), %s2752_s1, %s1957_s11  ;;  %s247_s16 = scalar_lea.vmem (%p2383_p3), [#allocation5], %s1890_s12 }
   0xf   : > { %v293_v0 = vld [vmem:[%s250_s15] sm:$0xff] (%p2383_p3)  ;;  %v295_v1 = vld [vmem:[%s250_s15 + $0x8] sm:$0xff] (%p2383_p3)  ;;  %v297_v2 = vld [vmem:[%s250_s15 + $0x10] sm:$0xff] (%p2383_p3) }
  0x10   : > { %294 = vst [vmem:[%s247_s16] sm:$0xff] (%p2383_p3), %v293_v0  ;;  %296 = vst [vmem:[%s247_s16 + $0x8] sm:$0xff] (%p2383_p3), %v295_v1  ;;  %v299_v3 = vld [vmem:[%s250_s15 + $0x18] sm:$0xff] (%p2383_p3)  ;;  %v301_v4 = vld [vmem:[%s250_s15 + $0x40] sm:$0xff] (%p2383_p3) }
  0x11   : > { %298 = vst [vmem:[%s247_s16 + $0x10] sm:$0xff] %v297_v2  ;;  %v303_v5 = vld [vmem:[%s250_s15 + $0x48] sm:$0xff]  ;;  %300 = vst [vmem:[%s247_s16 + $0x18] sm:$0xff] %v299_v3  ;;  %v305_v6 = vld [vmem:[%s250_s15 + $0x50] sm:$0xff] }
  0x12   : > { %302 = vst [vmem:[%s247_s16 + $0x20] sm:$0xff] %v301_v4  ;;  %304 = vst [vmem:[%s247_s16 + $0x28] sm:$0xff] %v303_v5  ;;  %v307_v7 = vld [vmem:[%s250_s15 + $0x58] sm:$0xff] }
  0x13   : > { %306 = vst [vmem:[%s247_s16 + $0x30] sm:$0xff] %v305_v6  ;;  %308 = vst [vmem:[%s247_s16 + $0x38] sm:$0xff] %v307_v7 }
  0x14 PF: > { %314 = sbr.rel (!%p2383_p3) target bundleno = 28 (0x1c), region = 78  ;;  %s316_s17 = sand.u32 (%p2383_p3), 1, %s2303_s25  }
  0x15   : > { %s1958_s18 = sshll.u32 (%p2383_p3), %s2307_s26, 5  ;;  %s1893_s19 = sshll.u32 (%p2383_p3), %s316_s17, 6 }
  0x16   : > { %s321_s22 = scalar_lea.vmem (%p2383_p3), %s2753_s2, %s1958_s18  ;;  %s318_s23 = scalar_lea.vmem (%p2383_p3), [#allocation6], %s1893_s19 }
  0x17   : > { %v364_v8 = vld [vmem:[%s321_s22] sm:$0xff] (%p2383_p3)  ;;  %v366_v9 = vld [vmem:[%s321_s22 + $0x8] sm:$0xff] (%p2383_p3)  ;;  %v368_v10 = vld [vmem:[%s321_s22 + $0x10] sm:$0xff] (%p2383_p3) }
  0x18   : > { %365 = vst [vmem:[%s318_s23] sm:$0xff] (%p2383_p3), %v364_v8  ;;  %367 = vst [vmem:[%s318_s23 + $0x8] sm:$0xff] (%p2383_p3), %v366_v9  ;;  %v370_v11 = vld [vmem:[%s321_s22 + $0x18] sm:$0xff] (%p2383_p3)  ;;  %v372_v12 = vld [vmem:[%s321_s22 + $0x40] sm:$0xff] (%p2383_p3) }
  0x19   : > { %369 = vst [vmem:[%s318_s23 + $0x10] sm:$0xff] %v368_v10  ;;  %v374_v13 = vld [vmem:[%s321_s22 + $0x48] sm:$0xff]  ;;  %371 = vst [vmem:[%s318_s23 + $0x18] sm:$0xff] %v370_v11  ;;  %v376_v14 = vld [vmem:[%s321_s22 + $0x50] sm:$0xff] }
  0x1a   : > { %373 = vst [vmem:[%s318_s23 + $0x20] sm:$0xff] %v372_v12  ;;  %375 = vst [vmem:[%s318_s23 + $0x28] sm:$0xff] %v374_v13  ;;  %v378_v15 = vld [vmem:[%s321_s22 + $0x58] sm:$0xff] }
  0x1b   : > { %377 = vst [vmem:[%s318_s23 + $0x30] sm:$0xff] %v376_v14  ;;  %379 = vst [vmem:[%s318_s23 + $0x38] sm:$0xff] %v378_v15 }
  0x1c PF: > { %p1896_p5 = scmp.ge.s32.totalorder %s2307_s26, 1  ;;  %p384_p6 = scmp.lt.s32.totalorder %s2307_s26, 3 }
  0x1e   : > { %p385_p7 = pnand %p1896_p5, %p384_p6 }
  0x1f   : > { %s391_s29 = sand.u32 (!%p385_p7), 1, %s2299_s24   ;;  %s1899_s30 = sshll.u32 (!%p385_p7), %s1886_s27, 2 }
  0x20   : > { %388 = sbr.rel (%p385_p7) target bundleno = 5581 (0x15cd), region = 116  ;;  %s1897_s9 = sshll.u32 (!%p385_p7), %s391_s29, 6 }
  0x21   : > { %p439_p8 = scmp.lt.s32.totalorder (!%p385_p7), %s1899_s30, 7  ;;  %s2417_s17 = scalar_lea.vmem (!%p385_p7), [#allocation5], %s1897_s9 }
  0x22   : > { %s2419_s18 = scalar_lea.vmem (!%p385_p7), [#allocation6], %s1897_s9  ;;  %p1903_p9 = scmp.ne.s32.totalorder (!%p385_p7), %s1886_s27, 0 }
  0x25   : > { %s2764_s30 = smov (!%p439_p8, %s1899_s30), 7  ;;  %455 = sbr.rel (%p1903_p9) target bundleno = 44 (0x2c), region = 128 }
  0x26   : > { %s1900_s10 = sshll.u32 %s2764_s30, 3 }
  0x27   : > { %s2410_s13 = scalar_lea.vmem %s2751_s0, %s1900_s10  ;;  %s2415_s16 = scalar_lea.vmem %s2758_s7, %s1900_s10 }
  0x2a   : > { %vm456_vm0 = vcmask 257024   ;;  %v2309_v16 = vmov 0.0  }
  0x2b   : > { %457 = vst.msk [vmem:[#allocation2] sm:$0xf] %vm456_vm0, %v2309_v16  ;;  %458 = vst.msk [vmem:[#allocation3] sm:$0xf] %vm456_vm0, %v2309_v16 }
  0x2c PF: > { %v2426_v17 = vld [vmem:[%s2754_s3 + $0x18] sm:$0xff]  ;;  %v2310_v18 = vmov 0.0   ;;  %v2432_v19 = vld [vmem:[%s2754_s3 + $0x10] sm:$0xff]  ;;  %vm2311_vm1 = vmmov 0   ;;  %v2442_v20 = vld [vmem:[%s2754_s3 + $0x8] sm:$0xff]  ;;  %vm468_vm2 = vcmask 261120  }
  0x2d   : > { %2031 = vmatprep.subr.mxu0 %v2310_v18  ;;  %2039 = vmatprep.mubr.msk.f32.mxu0 %vm2311_vm1, %v2310_v18  ;;  %v2451_v21 = vld [vmem:[%s2754_s3] sm:$0xff]  ;;  %vm465_vm3 = vcmask 257024   ;;  %s2312_s29 = smov 64   ;;  %s2313_s30 = smov 32   ;;  %v682_v61 = vld [vmem:[%s2410_s13 + $0x8] sm:$0xf] }
  0x2e   : > { %2032 = vmatpush3.msra.mxu0 %v2426_v17  ;;  %2042 = vmatprep.subr.mxu1 %v2310_v18  ;;  %v467_v24 = vld [vmem:[%s2410_s13] sm:$0xf]  ;;  %v576_v43 = vld [vmem:[%s2410_s13 + $0x4] sm:$0xf]  ;;  %v788_v15 = vld [vmem:[%s2410_s13 + $0xc] sm:$0xf] }
  0x2f   : > { %2033 = vmatprep.subr.mxu0 %v2310_v18  ;;  %2043 = vmatpush3.msra.mxu1 %v2426_v17  ;;  %s2314_s9 = smov 96  }
  0x30   : > { %2034 = vmatpush3.msra.mxu0 %v2432_v19  ;;  %2044 = vmatprep.subr.mxu1 %v2310_v18 }
  0x31   : > { %2035 = vmatprep.subr.mxu0 %v2310_v18  ;;  %2045 = vmatpush3.msra.mxu1 %v2432_v19 }
  0x32   : > { %2036 = vmatpush3.msra.mxu0 %v2442_v20  ;;  %v463_v22 = vld [vmem:[#allocation2] sm:$0xf]  ;;  %2046 = vmatprep.subr.mxu1 %v2310_v18  ;;  %v464_v23 = vld [vmem:[#allocation3] sm:$0xf] }
  0x33   : > { %2037 = vmatprep.subr.mxu0 %v2310_v18  ;;  %2047 = vmatpush3.msra.mxu1 %v2442_v20  ;;  %466 = vst.msk [vmem:[#allocation4] sm:$0xf] %vm465_vm3, %v464_v23 }
  0x34   : > { %2038 = vmatpush3.msra.mxu0 %v2451_v21  ;;  %2048 = vmatprep.subr.mxu1 %v2310_v18 }
  0x35   : > { %2040 = vmatmul.mubr.msk.f32.vlgmr.msra.gmra.mxu0 %vm468_vm2, %v463_v22  ;;  %2049 = vmatpush3.msra.mxu1 %v2451_v21 }
  0x36   : > { %2050 = vmatprep.mubr.msk.f32.mxu1 %vm2311_vm1, %v2310_v18  ;;  %2053 = vmatprep.subr.mxu0 %v2310_v18 }
  0x37   : > { %2054 = vmatpush3.msra.mxu0 %v2426_v17  ;;  %2061 = vmatprep.mubr.msk.f32.mxu0 %vm2311_vm1, %v2310_v18 }
  0x38   : > { %2055 = vmatprep.subr.mxu0 %v2310_v18  ;;  %2064 = vmatprep.subr.mxu1 %v2310_v18 }
  0x39   : > { %2056 = vmatpush3.msra.mxu0 %v2432_v19 }
  0x3a   : > { %2057 = vmatprep.subr.mxu0 %v2310_v18 }
  0x3b   : > { %2058 = vmatpush3.msra.mxu0 %v2442_v20 }
  0x3c   : > { %2059 = vmatprep.subr.mxu0 %v2310_v18 }
  0x3d   : > { %2060 = vmatpush3.msra.mxu0 %v2451_v21 }
  0x3e   : > { %2075 = vmatprep.subr.mxu0 %v2310_v18 }
  0xf5   : > { %v538_v25 = vpop.f32.mrf.mxu0 }
  0xf6   : > { %v542_v26 = vadd.f32 %v538_v25, %v467_v24 }
  0xf7   : > { %v2041_v27 = vpop.f32.mrf.mxu0 }
  0xf8   : > { %2205 = vtanh.f32 %v542_v26  ;;  %v1905_v29 = vmul.f32 -1.442695, %v542_v26 }
  0xfa   : > { %2207 = vpow2.f32 %v1905_v29 }
 0x105   : > { %v2206_v28 = vpop.eup %2205 }
 0x106   : > { %556 = vrot.lane.b32.xlu0 %v2206_v28, %s2312_s29 }
 0x107   : > { %v2208_v30 = vpop.eup %2207 }
 0x108   : > { %v546_v31 = vadd.f32 1.0, %v2208_v30 }
 0x10a   : > { %551 = vrot.lane.b32.xlu0 %v464_v23, %s2313_s30  ;;  %2209 = vrcp.f32 %v546_v31 }
 0x117   : > { %v2210_v32 = vpop.eup %2209 }
 0x178   : > { %v557_v33 = vpop.permute.xlu0 %556 }
 0x179   : > { %v559_v34 = vmul.f32 %v2210_v32, %v557_v33 }
 0x17b   : > { %561 = vrot.lane.b32.xlu1 %v559_v34, %s2313_s30 }
 0x17c   : > { %v552_v35 = vpop.permute.xlu0 %551 }
 0x17d   : > { %v554_v36 = vmul.f32 %v2210_v32, %v552_v35 }
 0x1ed   : > { %v562_v37 = vpop.permute.xlu1 %561 }
 0x1ee   : > { %v2481_v38 = vadd.f32 %v562_v37, %v554_v36 }
 0x1f0   : > { %2211 = vtanh.f32 %v2481_v38 }
 0x1fd   : > { %v2212_v39 = vpop.eup %2211 }
 0x1fe   : > { %567 = vrot.lane.b32.xlu1 %v2212_v39, %s2312_s29  ;;  %v894_v39 = vld [vmem:[%s2410_s13 + $0x10] sm:$0xf] }
 0x270   : > { %v568_v40 = vpop.permute.xlu1 %567 }
 0x271   : > { %v570_v41 = vmul.f32 %v2210_v32, %v568_v40 }
 0x273   : > { %578 = vrot.lane.b32.xlu0 %v570_v41, %s2313_s30 }
 0x2e5   : > { %v579_v42 = vpop.permute.xlu0 %578 }
 0x2e6   : > { %2051 = vmatmul.mubr.msk.f32.vlgmr.msra.gmra.mxu1 %vm468_vm2, %v579_v42 }
 0x2e7   : > { %2065 = vmatpush3.msra.mxu1 %v2426_v17  ;;  %2072 = vmatprep.mubr.msk.f32.mxu1 %vm2311_vm1, %v2310_v18 }
 0x2e8   : > { %2066 = vmatprep.subr.mxu1 %v2310_v18 }
 0x2e9   : > { %2067 = vmatpush3.msra.mxu1 %v2432_v19 }
 0x2ea   : > { %2068 = vmatprep.subr.mxu1 %v2310_v18 }
 0x2eb   : > { %2069 = vmatpush3.msra.mxu1 %v2442_v20 }
 0x2ec   : > { %2070 = vmatprep.subr.mxu1 %v2310_v18 }
 0x2ed   : > { %2071 = vmatpush3.msra.mxu1 %v2451_v21 }
 0x2ee   : > { %2086 = vmatprep.subr.mxu1 %v2310_v18 }
 0x3a6   : > { %v648_v44 = vpop.f32.mrf.mxu1 }
 0x3a7   : > { %v652_v45 = vadd.f32 %v648_v44, %v576_v43 }
 0x3a8   : > { %v2052_v46 = vpop.f32.mrf.mxu1 }
 0x3a9   : > { %2213 = vtanh.f32 %v652_v45  ;;  %v1907_v48 = vmul.f32 -1.442695, %v652_v45 }
 0x3ab   : > { %2215 = vpow2.f32 %v1907_v48 }
 0x3b6   : > { %v2214_v47 = vpop.eup %2213 }
 0x3b7   : > { %662 = vrot.lane.b32.xlu1 %v2214_v47, %s2312_s29 }
 0x3b8   : > { %v2216_v49 = vpop.eup %2215 }
 0x3b9   : > { %v656_v50 = vadd.f32 1.0, %v2216_v49 }
 0x3bb   : > { %2217 = vrcp.f32 %v656_v50 }
 0x3c8   : > { %v2218_v51 = vpop.eup %2217 }
 0x3c9   : > { %v660_v54 = vmul.f32 %v2218_v51, %v2481_v38 }
 0x429   : > { %v663_v52 = vpop.permute.xlu1 %662 }
 0x42a   : > { %v665_v53 = vmul.f32 %v2218_v51, %v663_v52 }
 0x42c   : > { %667 = vrot.lane.b32.xlu0 %v665_v53, %s2313_s30 }
 0x49e   : > { %v668_v55 = vpop.permute.xlu0 %667 }
 0x49f   : > { %v2501_v56 = vadd.f32 %v668_v55, %v660_v54 }
 0x4a1   : > { %2219 = vtanh.f32 %v2501_v56 }
 0x4ae   : > { %v2220_v57 = vpop.eup %2219 }
 0x4af   : > { %673 = vrot.lane.b32.xlu1 %v2220_v57, %s2312_s29 }
 0x521   : > { %v674_v58 = vpop.permute.xlu1 %673 }
 0x522   : > { %v676_v59 = vmul.f32 %v2218_v51, %v674_v58  ;;  %v1000_v58 = vld [vmem:[%s2410_s13 + $0x14] sm:$0xf] }
 0x524   : > { %684 = vrot.lane.b32.xlu0 %v676_v59, %s2313_s30 }
 0x596   : > { %v685_v60 = vpop.permute.xlu0 %684 }
 0x597   : > { %2062 = vmatmul.mubr.msk.f32.vlgmr.msra.gmra.mxu0 %vm468_vm2, %v685_v60 }
 0x598   : > { %2076 = vmatpush3.msra.mxu0 %v2426_v17  ;;  %2083 = vmatprep.mubr.msk.f32.mxu0 %vm2311_vm1, %v2310_v18 }
 0x599   : > { %2077 = vmatprep.subr.mxu0 %v2310_v18 }
 0x59a   : > { %2078 = vmatpush3.msra.mxu0 %v2432_v19 }
 0x59b   : > { %2079 = vmatprep.subr.mxu0 %v2310_v18 }
 0x59c   : > { %2080 = vmatpush3.msra.mxu0 %v2442_v20 }
 0x59d   : > { %2081 = vmatprep.subr.mxu0 %v2310_v18 }
 0x59e   : > { %2082 = vmatpush3.msra.mxu0 %v2451_v21 }
 0x59f   : > { %2097 = vmatprep.subr.mxu0 %v2310_v18 }
 0x657   : > { %v754_v62 = vpop.f32.mrf.mxu0 }
 0x658   : > { %v758_v63 = vadd.f32 %v754_v62, %v682_v61 }
 0x659   : > { %v2063_v0 = vpop.f32.mrf.mxu0 }
 0x65a   : > { %2221 = vtanh.f32 %v758_v63  ;;  %v1909_v2 = vmul.f32 -1.442695, %v758_v63 }
 0x65c   : > { %2223 = vpow2.f32 %v1909_v2 }
 0x667   : > { %v2222_v1 = vpop.eup %2221 }
 0x668   : > { %768 = vrot.lane.b32.xlu1 %v2222_v1, %s2312_s29 }
 0x669   : > { %v2224_v3 = vpop.eup %2223 }
 0x66a   : > { %v762_v4 = vadd.f32 1.0, %v2224_v3 }
 0x66c   : > { %2225 = vrcp.f32 %v762_v4 }
 0x679   : > { %v2226_v5 = vpop.eup %2225 }
 0x67a   : > { %v766_v8 = vmul.f32 %v2226_v5, %v2501_v56 }
 0x6da   : > { %v769_v6 = vpop.permute.xlu1 %768 }
 0x6db   : > { %v771_v7 = vmul.f32 %v2226_v5, %v769_v6 }
 0x6dd   : > { %773 = vrot.lane.b32.xlu0 %v771_v7, %s2313_s30  ;;  %v1106_v7 = vld [vmem:[%s2410_s13 + $0x18] sm:$0xf] }
 0x74f   : > { %v774_v9 = vpop.permute.xlu0 %773 }
 0x750   : > { %v2521_v10 = vadd.f32 %v774_v9, %v766_v8 }
 0x752   : > { %2227 = vtanh.f32 %v2521_v10 }
 0x75f   : > { %v2228_v11 = vpop.eup %2227 }
 0x760   : > { %779 = vrot.lane.b32.xlu1 %v2228_v11, %s2312_s29 }
 0x7d2   : > { %v780_v12 = vpop.permute.xlu1 %779 }
 0x7d3   : > { %v782_v13 = vmul.f32 %v2226_v5, %v780_v12 }
 0x7d5   : > { %790 = vrot.lane.b32.xlu0 %v782_v13, %s2313_s30 }
 0x847   : > { %v791_v14 = vpop.permute.xlu0 %790 }
 0x848   : > { %2073 = vmatmul.mubr.msk.f32.vlgmr.msra.gmra.mxu1 %vm468_vm2, %v791_v14 }
 0x849   : > { %2087 = vmatpush3.msra.mxu1 %v2426_v17  ;;  %2094 = vmatprep.mubr.msk.f32.mxu1 %vm2311_vm1, %v2310_v18 }
 0x84a   : > { %2088 = vmatprep.subr.mxu1 %v2310_v18 }
 0x84b   : > { %2089 = vmatpush3.msra.mxu1 %v2432_v19 }
 0x84c   : > { %2090 = vmatprep.subr.mxu1 %v2310_v18 }
 0x84d   : > { %2091 = vmatpush3.msra.mxu1 %v2442_v20 }
 0x84e   : > { %2092 = vmatprep.subr.mxu1 %v2310_v18 }
 0x84f   : > { %2093 = vmatpush3.msra.mxu1 %v2451_v21 }
 0x850   : > { %2108 = vmatprep.subr.mxu1 %v2310_v18 }
 0x908   : > { %v860_v16 = vpop.f32.mrf.mxu1 }
 0x909   : > { %v864_v22 = vadd.f32 %v860_v16, %v788_v15  ;;  %v1330_v16 = vld [vmem:[%s2755_s4 + $0x18] sm:$0xff] }
 0x90a   : > { %v2074_v23 = vpop.f32.mrf.mxu1 }
 0x90b   : > { %2229 = vtanh.f32 %v864_v22  ;;  %v1911_v25 = vmul.f32 -1.442695, %v864_v22  ;;  %v1329_v22 = vld [vmem:[%s2755_s4 + $0x10] sm:$0xff] }
 0x90d   : > { %2231 = vpow2.f32 %v1911_v25 }
 0x918   : > { %v2230_v24 = vpop.eup %2229 }
 0x919   : > { %874 = vrot.lane.b32.xlu1 %v2230_v24, %s2312_s29 }
 0x91a   : > { %v2232_v26 = vpop.eup %2231 }
 0x91b   : > { %v868_v27 = vadd.f32 1.0, %v2232_v26 }
 0x91d   : > { %2233 = vrcp.f32 %v868_v27 }
 0x92a   : > { %v2234_v28 = vpop.eup %2233 }
 0x92b   : > { %v872_v31 = vmul.f32 %v2234_v28, %v2521_v10 }
 0x98b   : > { %v875_v29 = vpop.permute.xlu1 %874 }
 0x98c   : > { %v877_v30 = vmul.f32 %v2234_v28, %v875_v29 }
 0x98e   : > { %879 = vrot.lane.b32.xlu0 %v877_v30, %s2313_s30 }
 0xa00   : > { %v880_v32 = vpop.permute.xlu0 %879 }
 0xa01   : > { %v2541_v33 = vadd.f32 %v880_v32, %v872_v31 }
 0xa03   : > { %2235 = vtanh.f32 %v2541_v33 }
 0xa10   : > { %v2236_v34 = vpop.eup %2235 }
 0xa11   : > { %885 = vrot.lane.b32.xlu1 %v2236_v34, %s2312_s29 }
 0xa83   : > { %v886_v35 = vpop.permute.xlu1 %885 }
 0xa84   : > { %v888_v36 = vmul.f32 %v2234_v28, %v886_v35 }
 0xa86   : > { %896 = vrot.lane.b32.xlu0 %v888_v36, %s2313_s30 }
 0xaf8   : > { %v897_v37 = vpop.permute.xlu0 %896 }
 0xaf9   : > { %2084 = vmatmul.mubr.msk.f32.vlgmr.msra.gmra.mxu0 %vm468_vm2, %v897_v37 }
 0xafa   : > { %2098 = vmatpush3.msra.mxu0 %v2426_v17  ;;  %2105 = vmatprep.mubr.msk.f32.mxu0 %vm2311_vm1, %v2310_v18 }
 0xafb   : > { %2099 = vmatprep.subr.mxu0 %v2310_v18 }
 0xafc   : > { %2100 = vmatpush3.msra.mxu0 %v2432_v19 }
 0xafd   : > { %2101 = vmatprep.subr.mxu0 %v2310_v18 }
 0xafe   : > { %2102 = vmatpush3.msra.mxu0 %v2442_v20 }
 0xaff   : > { %2103 = vmatprep.subr.mxu0 %v2310_v18 }
 0xb00   : > { %2104 = vmatpush3.msra.mxu0 %v2451_v21 }
 0xb01   : > { %2119 = vmatprep.subr.mxu0 %v1330_v16 }
 0xbb9   : > { %v966_v40 = vpop.f32.mrf.mxu0 }
 0xbba   : > { %v970_v41 = vadd.f32 %v966_v40, %v894_v39  ;;  %v1439_v39 = vld [vmem:[%s2756_s5 + $0x18] sm:$0xff] }
 0xbbb   : > { %v2085_v42 = vpop.f32.mrf.mxu0 }
 0xbbc   : > { %2237 = vtanh.f32 %v970_v41  ;;  %v1913_v44 = vmul.f32 -1.442695, %v970_v41 }
 0xbbe   : > { %2239 = vpow2.f32 %v1913_v44 }
 0xbc9   : > { %v2238_v43 = vpop.eup %2237 }
 0xbca   : > { %980 = vrot.lane.b32.xlu1 %v2238_v43, %s2312_s29 }
 0xbcb   : > { %v2240_v45 = vpop.eup %2239 }
 0xbcc   : > { %v974_v46 = vadd.f32 1.0, %v2240_v45 }
 0xbce   : > { %2241 = vrcp.f32 %v974_v46  ;;  %v1331_v46 = vld [vmem:[%s2417_s17] sm:$0xff] }
 0xbdb   : > { %v2242_v47 = vpop.eup %2241 }
 0xbdc   : > { %v978_v50 = vmul.f32 %v2242_v47, %v2541_v33 }
 0xc3c   : > { %v981_v48 = vpop.permute.xlu1 %980 }
 0xc3d   : > { %v983_v49 = vmul.f32 %v2242_v47, %v981_v48  ;;  %v1332_v48 = vld [vmem:[%s2417_s17 + $0x8] sm:$0xff] }
 0xc3f   : > { %985 = vrot.lane.b32.xlu0 %v983_v49, %s2313_s30 }
 0xcb1   : > { %v986_v51 = vpop.permute.xlu0 %985 }
 0xcb2   : > { %v988_v52 = vadd.f32 %v986_v51, %v978_v50  ;;  %v1438_v51 = vld [vmem:[%s2756_s5 + $0x10] sm:$0xff] }
 0xcb4   : > { %2243 = vtanh.f32 %v988_v52 }
 0xcc1   : > { %v2244_v53 = vpop.eup %2243 }
 0xcc2   : > { %991 = vrot.lane.b32.xlu1 %v2244_v53, %s2312_s29  ;;  %v1437_v53 = vld [vmem:[%s2756_s5 + $0x8] sm:$0xff] }
 0xd34   : > { %v992_v54 = vpop.permute.xlu1 %991 }
 0xd35   : > { %v994_v55 = vmul.f32 %v2242_v47, %v992_v54  ;;  %v1436_v54 = vld [vmem:[%s2756_s5] sm:$0xff] }
 0xd37   : > { %1002 = vrot.lane.b32.xlu0 %v994_v55, %s2313_s30 }
 0xda9   : > { %v1003_v57 = vpop.permute.xlu0 %1002 }
 0xdaa   : > { %2095 = vmatmul.mubr.msk.f32.vlgmr.msra.gmra.mxu1 %vm468_vm2, %v1003_v57  ;;  %v1334_v57 = vld [vmem:[%s2417_s17 + $0x18] sm:$0xff] }
 0xdab   : > { %2109 = vmatpush3.msra.mxu1 %v2426_v17  ;;  %2116 = vmatprep.mubr.msk.f32.mxu1 %vm2311_vm1, %v2310_v18 }
 0xdac   : > { %2110 = vmatprep.subr.mxu1 %v2310_v18 }
 0xdad   : > { %2111 = vmatpush3.msra.mxu1 %v2432_v19 }
 0xdae   : > { %2112 = vmatprep.subr.mxu1 %v2310_v18 }
 0xdaf   : > { %2113 = vmatpush3.msra.mxu1 %v2442_v20 }
 0xdb0   : > { %2114 = vmatprep.subr.mxu1 %v2310_v18 }
 0xdb1   : > { %2115 = vmatpush3.msra.mxu1 %v2451_v21 }
 0xdb2   : > { %2133 = vmatprep.subr.mxu1 %v1439_v39 }
 0xe6a   : > { %v1072_v59 = vpop.f32.mrf.mxu1 }
 0xe6b   : > { %v1076_v60 = vadd.f32 %v1072_v59, %v1000_v58  ;;  %v1333_v59 = vld [vmem:[%s2417_s17 + $0x10] sm:$0xff] }
 0xe6c   : > { %v2096_v61 = vpop.f32.mrf.mxu1 }
 0xe6d   : > { %2245 = vtanh.f32 %v1076_v60  ;;  %v1915_v62 = vmul.f32 -1.442695, %v1076_v60 }
 0xe6f   : > { %2247 = vpow2.f32 %v1915_v62  ;;  %v1932_v62 = vld [vmem:[%s2755_s4 + $0x38] sm:$0xff] }
 0xe7a   : > { %v2246_v17 = vpop.eup %2245 }
 0xe7b   : > { %1086 = vrot.lane.b32.xlu1 %v2246_v17, %s2312_s29 }
 0xe7c   : > { %v2248_v63 = vpop.eup %2247 }
 0xe7d   : > { %v1080_v19 = vadd.f32 1.0, %v2248_v63  ;;  %v1931_v63 = vld [vmem:[%s2755_s4 + $0x30] sm:$0xff] }
 0xe7f   : > { %2249 = vrcp.f32 %v1080_v19  ;;  %v1930_v19 = vld [vmem:[%s2755_s4 + $0x28] sm:$0xff] }
 0xe8c   : > { %v2250_v0 = vpop.eup %2249 }
 0xe8d   : > { %v1084_v18 = vmul.f32 %v2250_v0, %v988_v52 }
 0xeed   : > { %v1087_v20 = vpop.permute.xlu1 %1086 }
 0xeee   : > { %v1089_v1 = vmul.f32 %v2250_v0, %v1087_v20 }
 0xef0   : > { %1091 = vrot.lane.b32.xlu0 %v1089_v1, %s2313_s30 }
 0xf62   : > { %v1092_v21 = vpop.permute.xlu0 %1091 }
 0xf63   : > { %v1094_v2 = vadd.f32 %v1092_v21, %v1084_v18  ;;  %v1212_v18 = vld [vmem:[%s2410_s13 + $0x1c] sm:$0xf] }
 0xf65   : > { %2251 = vtanh.f32 %v1094_v2 }
 0xf72   : > { %v2252_v3 = vpop.eup %2251 }
 0xf73   : > { %1097 = vrot.lane.b32.xlu1 %v2252_v3, %s2312_s29 }
 0xfe5   : > { %v1098_v4 = vpop.permute.xlu1 %1097 }
 0xfe6   : > { %v1100_v5 = vmul.f32 %v2250_v0, %v1098_v4  ;;  %v1929_v0 = vld [vmem:[%s2755_s4 + $0x20] sm:$0xff] }
 0xfe7   : > { %v1924_v4 = vld [vmem:[%s2757_s6] ss:$0 sm:$0xff] }
 0xfe8   : > { %1108 = vrot.lane.b32.xlu0 %v1100_v5, %s2313_s30 }
0x105a   : > { %v1109_v6 = vpop.permute.xlu0 %1108 }
0x105b   : > { %2106 = vmatmul.mubr.msk.f32.vlgmr.msra.gmra.mxu0 %vm468_vm2, %v1109_v6 }
0x105c   : > { %2120 = vmatpush3.msra.mxu0 %v1330_v16 }
0x105d   : > { %2121 = vmatprep.subr.mxu0 %v1329_v22 }
0x105e   : > { %2122 = vmatpush3.msra.mxu0 %v1329_v22  ;;  %v1944_v22 = vld [vmem:[%s2756_s5 + $0x38] sm:$0xff] }
0x111b   : > { %v1178_v8 = vpop.f32.mrf.mxu0 }
0x111c   : > { %v1182_v9 = vadd.f32 %v1178_v8, %v1106_v7  ;;  %v1545_v7 = vld [vmem:[%s2419_s18 + $0x8] sm:$0xff] }
0x111d   : > { %v2107_v11 = vpop.f32.mrf.mxu0 }
0x111e   : > { %2253 = vtanh.f32 %v1182_v9  ;;  %v1917_v13 = vmul.f32 -1.442695, %v1182_v9  ;;  %v1544_v9 = vld [vmem:[%s2419_s18] sm:$0xff] }
0x1120   : > { %2255 = vpow2.f32 %v1917_v13 }
0x112b   : > { %v2254_v12 = vpop.eup %2253 }
0x112c   : > { %1192 = vrot.lane.b32.xlu1 %v2254_v12, %s2312_s29 }
0x112d   : > { %v2256_v14 = vpop.eup %2255 }
0x112e   : > { %v1186_v15 = vadd.f32 1.0, %v2256_v14 }
0x1130   : > { %572 = vrot.lane.b32.xlu1 %v2481_v38, %s2314_s9  ;;  %2257 = vrcp.f32 %v1186_v15  ;;  %v1328_v38 = vld [vmem:[%s2755_s4 + $0x8] sm:$0xff] }
0x1131   : > { %2123 = vmatprep.subr.mxu0 %v1328_v38 }
0x1132   : > { %2124 = vmatpush3.msra.mxu0 %v1328_v38  ;;  %v1943_v38 = vld [vmem:[%s2756_s5 + $0x30] sm:$0xff] }
0x1134   : > { %784 = vrot.lane.b32.xlu1 %v2521_v10, %s2314_s9  ;;  %v1327_v10 = vld [vmem:[%s2755_s4] sm:$0xff] }
0x1135   : > { %2125 = vmatprep.subr.mxu0 %v1327_v10 }
0x1136   : > { %2126 = vmatpush3.msra.mxu0 %v1327_v10 }
0x1137   : > { %2147 = vmatprep.subr.mxu0 %v1932_v62 }
0x1138   : > { %996 = vrot.lane.b32.xlu1 %v988_v52, %s2314_s9 }
0x113d   : > { %v2258_v23 = vpop.eup %2257 }
0x113e   : > { %v1190_v30 = vmul.f32 %v2258_v23, %v1094_v2 }
0x119e   : > { %v1193_v24 = vpop.permute.xlu1 %1192 }
0x119f   : > { %v1195_v25 = vmul.f32 %v2258_v23, %v1193_v24 }
0x11a1   : > { %1197 = vrot.lane.b32.xlu0 %v1195_v25, %s2313_s30  ;;  %v1547_v25 = vld [vmem:[%s2419_s18 + $0x18] sm:$0xff] }
0x11a2   : > { %v573_v26 = vpop.permute.xlu1 %572 }
0x11a3   : > { %575 = vst.msk [vmem:[#allocation4 + $0x4] sm:$0xf] %vm465_vm3, %v573_v26 }
0x11a5   : > { %678 = vrot.lane.b32.xlu0 %v2501_v56, %s2314_s9 }
0x11a6   : > { %v785_v27 = vpop.permute.xlu1 %784 }
0x11a7   : > { %787 = vst.msk [vmem:[#allocation4 + $0xc] sm:$0xf] %vm465_vm3, %v785_v27  ;;  %v1546_v27 = vld [vmem:[%s2419_s18 + $0x10] sm:$0xff] }
0x11a9   : > { %890 = vrot.lane.b32.xlu0 %v2541_v33, %s2314_s9 }
0x11aa   : > { %v997_v28 = vpop.permute.xlu1 %996  ;;  %v2604_v29 = vld [vmem:[#allocation4] sm:$0xff] }
0x11ab   : > { %999 = vst.msk [vmem:[#allocation4 + $0x14] sm:$0xf] %vm465_vm3, %v997_v28  ;;  %2127 = vmatprep.mubr.msk.f32.mxu0 %vm468_vm2, %v2604_v29  ;;  %v1941_v28 = vld [vmem:[%s2756_s5 + $0x20] sm:$0xff] }
0x11ad   : > { %1102 = vrot.lane.b32.xlu0 %v1094_v2, %s2314_s9 }
0x1213   : > { %v1198_v31 = vpop.permute.xlu0 %1197 }
0x1214   : > { %v2610_v32 = vadd.f32 %v1198_v31, %v1190_v30 }
0x1216   : > { %2259 = vtanh.f32 %v2610_v32  ;;  %1208 = vrot.lane.b32.xlu1 %v2610_v32, %s2314_s9 }
0x1217   : > { %v679_v56 = vpop.permute.xlu0 %678 }
0x1218   : > { %681 = vst.msk [vmem:[#allocation4 + $0x8] sm:$0xf] %vm465_vm3, %v679_v56 }
0x121b   : > { %v891_v33 = vpop.permute.xlu0 %890 }
0x121c   : > { %893 = vst.msk [vmem:[#allocation4 + $0x10] sm:$0xf] %vm465_vm3, %v891_v33 }
0x121f   : > { %v1103_v34 = vpop.permute.xlu0 %1102  ;;  %v2617_v35 = vld [vmem:[#allocation4 + $0x8] sm:$0xff] }
0x1220   : > { %1105 = vst.msk [vmem:[#allocation4 + $0x18] sm:$0xf] %vm465_vm3, %v1103_v34  ;;  %2128 = vmatmul.mubr.msk.f32.vlgmr.msra.gmra.mxu0 %vm468_vm2, %v2617_v35 }
0x1221   : > { %2148 = vmatpush3.msra.mxu0 %v1932_v62 }
0x1222   : > { %2149 = vmatprep.subr.mxu0 %v1931_v63 }
0x1223   : > { %v2260_v36 = vpop.eup %2259  ;;  %v2622_v37 = vld [vmem:[#allocation4 + $0x10] sm:$0xff]  ;;  %2150 = vmatpush3.msra.mxu0 %v1931_v63  ;;  %v1946_v63 = vld [vmem:[%s2757_s6 + $0x1] ss:$0 sm:$0xff] }
0x1224   : > { %2130 = vmatprep.mubr.msk.f32.mxu0 %vm468_vm2, %v2622_v37  ;;  %1203 = vrot.lane.b32.xlu0 %v2260_v36, %s2312_s29 }
0x1225   : > { %2151 = vmatprep.subr.mxu0 %v1930_v19 }
0x1226   : > { %2152 = vmatpush3.msra.mxu0 %v1930_v19 }
0x1227   : > { %2153 = vmatprep.subr.mxu0 %v1929_v0 }
0x1228   : > { %2154 = vmatpush3.msra.mxu0 %v1929_v0 }
0x1288   : > { %v1209_v40 = vpop.permute.xlu1 %1208 }
0x1289   : > { %1211 = vst.msk [vmem:[#allocation4 + $0x1c] sm:$0xf] %vm465_vm3, %v1209_v40 }
0x1290   : > { %v2631_v41 = vld [vmem:[#allocation4 + $0x18] sm:$0xff] }
0x1291   : > { %2131 = vmatmul.mubr.msk.f32.gmra.mxu0 %vm468_vm2, %v2631_v41 }
0x1296   : > { %v1204_v42 = vpop.permute.xlu0 %1203 }
0x1297   : > { %v1206_v43 = vmul.f32 %v2258_v23, %v1204_v42  ;;  %v1942_v23 = vld [vmem:[%s2756_s5 + $0x28] sm:$0xff] }
0x1299   : > { %1214 = vrot.lane.b32.xlu1 %v1206_v43, %s2313_s30 }
0x12e0   : > { %v2129_v44 = vpop.f32.mrf.mxu0 }
0x12e1   : > { %v1419_v49 = vadd.f32 %v2129_v44, %v1332_v48  ;;  %v1933_v44 = vld [vmem:[%s2417_s17 + $0x20] sm:$0xff] }
0x12e2   : > { %v1413_v45 = vpop.f32.mrf.mxu0 }
0x12e3   : > { %v1414_v47 = vadd.f32 %v1413_v45, %v1331_v46 }
0x12e5   : > { %2261 = vtanh.f32 %v1414_v47 }
0x12e6   : > { %2263 = vtanh.f32 %v1419_v49 }
0x12f2   : > { %v2262_v52 = vpop.eup %2261 }
0x12f3   : > { %v2264_v55 = vpop.eup %2263 }
0x130b   : > { %v1215_v50 = vpop.permute.xlu1 %1214 }
0x130c   : > { %2117 = vmatmul.mubr.msk.f32.vlgmr.msra.gmra.mxu1 %vm468_vm2, %v1215_v50 }
0x130d   : > { %2134 = vmatpush3.msra.mxu1 %v1439_v39  ;;  %2141 = vmatprep.mubr.msk.f32.mxu1 %vm468_vm2, %v2262_v52 }
0x130e   : > { %2135 = vmatprep.subr.mxu1 %v1438_v51 }
0x130f   : > { %2136 = vmatpush3.msra.mxu1 %v1438_v51 }
0x1310   : > { %2137 = vmatprep.subr.mxu1 %v1437_v53 }
0x1311   : > { %2138 = vmatpush3.msra.mxu1 %v1437_v53  ;;  %v1936_v53 = vld [vmem:[%s2417_s17 + $0x38] sm:$0xff] }
0x1312   : > { %2139 = vmatprep.subr.mxu1 %v1436_v54 }
0x1313   : > { %2140 = vmatpush3.msra.mxu1 %v1436_v54 }
0x1314   : > { %2142 = vmatmul.mubr.msk.f32.vlgmr.msra.gmra.mxu1 %vm468_vm2, %v2264_v55  ;;  %2161 = vmatprep.subr.mxu1 %v1944_v22  ;;  %v1935_v55 = vld [vmem:[%s2417_s17 + $0x30] sm:$0xff] }
0x1315   : > { %2162 = vmatpush3.msra.mxu1 %v1944_v22 }
0x1316   : > { %2163 = vmatprep.subr.mxu1 %v1943_v38 }
0x1317   : > { %2164 = vmatpush3.msra.mxu1 %v1943_v38 }
0x1318   : > { %2165 = vmatprep.subr.mxu1 %v1942_v23 }
0x1319   : > { %2166 = vmatpush3.msra.mxu1 %v1942_v23 }
0x131a   : > { %2167 = vmatprep.subr.mxu1 %v1941_v28 }
0x131b   : > { %2168 = vmatpush3.msra.mxu1 %v1941_v28 }
0x1351   : > { %v2132_v58 = vpop.f32.mrf.mxu0 }
0x1352   : > { %v1429_v60 = vadd.f32 %v2132_v58, %v1334_v57 }
0x1353   : > { %v1423_v61 = vpop.f32.mrf.mxu0 }
0x1354   : > { %v1424_v17 = vadd.f32 %v1423_v61, %v1333_v59 }
0x1356   : > { %2265 = vtanh.f32 %v1424_v17 }
0x1357   : > { %2267 = vtanh.f32 %v1429_v60 }
0x1363   : > { %v2266_v20 = vpop.eup %2265 }
0x1364   : > { %v2268_v1 = vpop.eup %2267  ;;  %2144 = vmatprep.mubr.msk.f32.mxu1 %vm468_vm2, %v2266_v20  ;;  %v1952_v20 = vld [vmem:[%s2419_s18 + $0x28] sm:$0xff] }
0x1365   : > { %2145 = vmatmul.mubr.msk.f32.gmra.mxu1 %vm468_vm2, %v2268_v1 }
0x13cc   : > { %v1284_v21 = vpop.f32.mrf.mxu1 }
0x13cd   : > { %v1288_v2 = vadd.f32 %v1284_v21, %v1212_v18  ;;  %v1951_v18 = vld [vmem:[%s2419_s18 + $0x20] sm:$0xff] }
0x13ce   : > { %v2118_v3 = vpop.f32.mrf.mxu1 }
0x13cf   : > { %2269 = vtanh.f32 %v1288_v2  ;;  %v1919_v31 = vmul.f32 -1.442695, %v1288_v2 }
0x13d1   : > { %2271 = vpow2.f32 %v1919_v31 }
0x13d4   : > { %v2143_v5 = vpop.f32.mrf.mxu1 }
0x13d5   : > { %v1531_v6 = vadd.f32 %v2143_v5, %v1924_v4 }
0x13d6   : > { %v1525_v8 = vpop.f32.mrf.mxu1 }
0x13d7   : > { %v1526_v11 = vadd.f32 %v1924_v4, %v1525_v8  ;;  %v1549_v12 = vmul.f32 %v1545_v7, %v1531_v6 }
0x13d9   : > { %v1548_v13 = vmul.f32 %v1544_v9, %v1526_v11  ;;  %v2676_v16 = vadd.f32 %v1549_v12, %v2617_v35  ;;  %v1954_v9 = vld [vmem:[%s2419_s18 + $0x38] sm:$0xff]  ;;  %v1953_v12 = vld [vmem:[%s2419_s18 + $0x30] sm:$0xff] }
0x13db   : > { %v2673_v14 = vadd.f32 %v1548_v13, %v2604_v29 }
0x13dc   : > { %v2270_v15 = vpop.eup %2269 }
0x13dd   : > { %2155 = vmatprep.mubr.msk.f32.mxu0 %vm468_vm2, %v2673_v14  ;;  %1298 = vrot.lane.b32.xlu0 %v2270_v15, %s2312_s29 }
0x13de   : > { %2156 = vmatmul.mubr.msk.f32.vlgmr.msra.gmra.mxu0 %vm468_vm2, %v2676_v16  ;;  %v2272_v35 = vpop.eup %2271 }
0x13df   : > { %v1292_v36 = vadd.f32 1.0, %v2272_v35 }
0x13e1   : > { %2273 = vrcp.f32 %v1292_v36 }
0x13ee   : > { %v2274_v39 = vpop.eup %2273 }
0x13ef   : > { %v1296_v49 = vmul.f32 %v2274_v39, %v2610_v32 }
0x1425   : > { %v2146_v10 = vpop.f32.mrf.mxu1 }
0x1426   : > { %v1541_v24 = vadd.f32 %v2146_v10, %v1924_v4 }
0x1427   : > { %v1535_v26 = vpop.f32.mrf.mxu1 }
0x1428   : > { %v1536_v29 = vadd.f32 %v1924_v4, %v1535_v26  ;;  %v1551_v30 = vmul.f32 %v1547_v25, %v1541_v24 }
0x142a   : > { %v1550_v56 = vmul.f32 %v1546_v27, %v1536_v29  ;;  %v2701_v34 = vadd.f32 %v1551_v30, %v2631_v41 }
0x142c   : > { %v2698_v33 = vadd.f32 %v1550_v56, %v2622_v37  ;;  %v1934_v37 = vld [vmem:[%s2417_s17 + $0x28] sm:$0xff] }
0x142e   : > { %2158 = vmatprep.mubr.msk.f32.mxu0 %vm468_vm2, %v2698_v33 }
0x142f   : > { %2159 = vmatmul.mubr.msk.f32.gmra.mxu0 %vm468_vm2, %v2701_v34 }
0x144f   : > { %v1299_v40 = vpop.permute.xlu0 %1298 }
0x1450   : > { %v1301_v42 = vmul.f32 %v2274_v39, %v1299_v40 }
0x1452   : > { %1303 = vrot.lane.b32.xlu1 %v1301_v42, %s2313_s30 }
0x149e   : > { %v2157_v43 = vpop.f32.mrf.mxu0 }
0x149f   : > { %v1650_v41 = vadd.f32 %v2157_v43, %v1934_v37 }
0x14a0   : > { %v1644_v45 = vpop.f32.mrf.mxu0 }
0x14a1   : > { %v1645_v46 = vadd.f32 %v1933_v44, %v1644_v45 }
0x14a3   : > { %2275 = vtanh.f32 %v1645_v46 }
0x14a4   : > { %2277 = vtanh.f32 %v1650_v41 }
0x14b0   : > { %v2276_v47 = vpop.eup %2275 }
0x14b1   : > { %v2278_v48 = vpop.eup %2277  ;;  %2169 = vmatprep.mubr.msk.f32.mxu1 %vm468_vm2, %v2276_v47 }
0x14b2   : > { %2170 = vmatmul.mubr.msk.f32.vlgmr.msra.gmra.mxu1 %vm468_vm2, %v2278_v48 }
0x14c4   : > { %v1304_v50 = vpop.permute.xlu1 %1303 }
0x14c5   : > { %v1306_v51 = vadd.f32 %v1304_v50, %v1296_v49 }
0x14c7   : > { %2279 = vtanh.f32 %v1306_v51 }
0x14d4   : > { %v2280_v52 = vpop.eup %2279 }
0x14d5   : > { %1309 = vrot.lane.b32.xlu0 %v2280_v52, %s2312_s29 }
0x14d9   : > { %1319 = vrot.lane.b32.xlu0 %v1306_v51, %s2314_s9 }
0x14ef   : > { %v2160_v54 = vpop.f32.mrf.mxu0 }
0x14f0   : > { %v1660_v57 = vadd.f32 %v2160_v54, %v1936_v53 }
0x14f1   : > { %v1654_v58 = vpop.f32.mrf.mxu0 }
0x14f2   : > { %v1655_v59 = vadd.f32 %v1935_v55, %v1654_v58 }
0x14f4   : > { %2281 = vtanh.f32 %v1655_v59 }
0x14f5   : > { %2283 = vtanh.f32 %v1660_v57 }
0x1501   : > { %v2282_v60 = vpop.eup %2281 }
0x1502   : > { %v2284_v32 = vpop.eup %2283  ;;  %2172 = vmatprep.mubr.msk.f32.mxu1 %vm468_vm2, %v2282_v60 }
0x1503   : > { %2173 = vmatmul.mubr.msk.f32.gmra.mxu1 %vm468_vm2, %v2284_v32 }
0x1547   : > { %v1310_v61 = vpop.permute.xlu0 %1309 }
0x1548   : > { %v1312_v17 = vmul.f32 %v2274_v39, %v1310_v61 }
0x154a   : > { %1314 = vrot.lane.b32.xlu1 %v1312_v17, %s2313_s30 }
0x154b   : > { %v1320_v62 = vpop.permute.xlu0 %1319 }
0x154c   : > { %1322 = vst.msk [vmem:[#allocation3] sm:$0xf] %vm465_vm3, %v1320_v62 }
0x1572   : > { %v2171_v19 = vpop.f32.mrf.mxu1 }
0x1573   : > { %v1764_v0 = vadd.f32 %v2171_v19, %v1946_v63 }
0x1574   : > { %v1758_v1 = vpop.f32.mrf.mxu1 }
0x1575   : > { %v1759_v21 = vadd.f32 %v1946_v63, %v1758_v1  ;;  %v1783_v2 = vmul.f32 %v1952_v20, %v1764_v0 }
0x1577   : > { %v1782_v3 = vmul.f32 %v1951_v18, %v1759_v21  ;;  %v1787_v5 = vadd.f32 %v1783_v2, %v2676_v16 }
0x1579   : > { %v1786_v4 = vadd.f32 %v1782_v3, %v2673_v14  ;;  %1791 = vst.msk [vmem:[%s2415_s16 + $0x8] sm:$0xff] %vm468_vm2, %v1787_v5 }
0x157b   : > { %1790 = vst.msk [vmem:[%s2415_s16] sm:$0xff] %vm468_vm2, %v1786_v4 }
0x15bc   : > { %v1315_v6 = vpop.permute.xlu1 %1314 }
0x15bd   : > { %1317 = vst.msk [vmem:[#allocation2] sm:$0xf] %vm465_vm3, %v1315_v6 }
0x15c3   : > { %v2174_v7 = vpop.f32.mrf.mxu1 }
0x15c4   : > { %v1774_v8 = vadd.f32 %v2174_v7, %v1946_v63 }
0x15c5   : > { %v1768_v11 = vpop.f32.mrf.mxu1 }
0x15c6   : > { %v1769_v13 = vadd.f32 %v1946_v63, %v1768_v11  ;;  %v1785_v15 = vmul.f32 %v1954_v9, %v1774_v8 }
0x15c8   : > { %v1784_v22 = vmul.f32 %v1953_v12, %v1769_v13  ;;  %v1789_v16 = vadd.f32 %v1785_v15, %v2701_v34 }
0x15ca   : > { %v1788_v14 = vadd.f32 %v1784_v22, %v2698_v33  ;;  %1793 = vst.msk [vmem:[%s2415_s16 + $0x18] sm:$0xff] %vm468_vm2, %v1789_v16 }
0x15cc   : > { %1792 = vst.msk [vmem:[%s2415_s16 + $0x10] sm:$0xff] %vm468_vm2, %v1788_v14 }
0x15cd PF: > { %p14_p10 = scmp.ge.s32.totalorder %s2372_s28, 4   ;;  %s2760_s24 = smov %s2303_s25 }
0x15ce   : > { %s2761_s25 = smov %s2381_s8  ;;  %s2762_s26 = smov %s2372_s28 }
0x15cf   :  { %16 = sbr.rel (!%p14_p10) target bundleno = 2 (0x2), region = 179 }

</bundles_post_ra>
